<compile_context>
chip_gen: v5e
topology: v5e:2x2
jax: 0.10.0
libtpu: 0.0.40
codegen_flags: <defaults>
</compile_context>

<pallas_src>
import functools

import jax
import jax.numpy as jnp
from jax.experimental import pallas as pl
from jax.experimental.pallas import tpu as pltpu

IN_DIM = 28 * 28          # 784
IN_PAD = 896              # 7 * 128, lane-aligned K for fc1
HIDDEN_1 = 512
HIDDEN_2 = 512
OUT_DIM = 10
OUT_PAD = 128             # lane-dense padded output width


def mlp_kernel(x_ref, w1_ref, b1_ref, w2_ref, b2_ref, w3_ref, b3_ref, o_ref):
    # fc1: bf16 MXU matmul, f32 accumulation; bias + ReLU epilogue in f32.
    h1 = jnp.dot(x_ref[...], w1_ref[...], preferred_element_type=jnp.float32)
    h1 = jnp.maximum(h1 + b1_ref[...], 0.0)
    # Dropout(p=0.2): identity at inference (eval mode) -- no-op.
    # fc2
    h2 = jnp.dot(h1.astype(jnp.bfloat16), w2_ref[...],
                 preferred_element_type=jnp.float32)
    h2 = jnp.maximum(h2 + b2_ref[...], 0.0)
    # Dropout(p=0.2): identity at inference -- no-op.
    # fc3 (lane-padded to 128 output columns; extra columns have zero W/b).
    out = jnp.dot(h2.astype(jnp.bfloat16), w3_ref[...],
                  preferred_element_type=jnp.float32)
    o_ref[...] = (out + b3_ref[...]).astype(o_ref.dtype)


def _round_up(x, m):
    return ((x + m - 1) // m) * m


@functools.partial(jax.jit, static_argnames=("batch_tile",))
def net_forward(x_nchw, params, *, batch_tile=256):
    """x_nchw: (B, 1, 28, 28) float32. Returns (B, 10) f32 logits."""
    B = x_nchw.shape[0]
    x = x_nchw.reshape(B, IN_DIM).astype(jnp.float32)  # == torch .view(-1, 784)

    w1, b1, w2, b2, w3, b3 = params

    # Batch tile: 256 rows fills the MXU on v6e/v7x; for tiny batches just
    # round up to the sublane multiple (8) so nothing is wasted.
    TB = min(batch_tile, _round_up(B, 8))
    B_pad = _round_up(B, TB)

    # Pad batch rows and K (784 -> 896); activations go in as bf16.
    x_p = jnp.zeros((B_pad, IN_PAD), jnp.float32).at[:B, :IN_DIM].set(x)
    x_p = x_p.astype(jnp.bfloat16)

    # PyTorch Linear stores (out, in); kernel wants (in, out). Weights -> bf16.
    w1_t = jnp.zeros((IN_PAD, HIDDEN_1), jnp.float32).at[:IN_DIM, :].set(w1.T)
    w1_t = w1_t.astype(jnp.bfloat16)
    w2_t = w2.T.astype(jnp.bfloat16)
    w3_t = jnp.zeros((HIDDEN_2, OUT_PAD), jnp.float32).at[:, :OUT_DIM].set(w3.T)
    w3_t = w3_t.astype(jnp.bfloat16)

    # Biases stay f32 (added to the f32 accumulators).
    b1_2d = b1.reshape(1, HIDDEN_1).astype(jnp.float32)
    b2_2d = b2.reshape(1, HIDDEN_2).astype(jnp.float32)
    b3_2d = jnp.zeros((1, OUT_PAD), jnp.float32).at[:, :OUT_DIM].set(
        b3.reshape(1, OUT_DIM).astype(jnp.float32))

    grid = (B_pad // TB,)
    batch_spec = lambda shape: pl.BlockSpec(shape, lambda i: (i, 0))
    const_spec = lambda shape: pl.BlockSpec(shape, lambda i: (0, 0))

    out_p = pl.pallas_call(
        mlp_kernel,
        out_shape=jax.ShapeDtypeStruct((B_pad, OUT_PAD), jnp.float32),
        grid=grid,
        in_specs=[
            batch_spec((TB, IN_PAD)),            # x tile (pipelined over batch)
            const_spec((IN_PAD, HIDDEN_1)),      # w1 (VMEM-resident)
            const_spec((1, HIDDEN_1)),           # b1
            const_spec((HIDDEN_1, HIDDEN_2)),    # w2
            const_spec((1, HIDDEN_2)),           # b2
            const_spec((HIDDEN_2, OUT_PAD)),     # w3 (lane-padded)
            const_spec((1, OUT_PAD)),            # b3 (lane-padded)
        ],
        out_specs=batch_spec((TB, OUT_PAD)),
        compiler_params=pltpu.CompilerParams(
            dimension_semantics=("parallel",),   # shard batch across TCs (v7x)
            vmem_limit_bytes=16 << 20,           # working set is only a few MiB
        ),
    )(x_p, w1_t, b1_2d, w2_t, b2_2d, w3_t, b3_2d)

    # Strip batch padding and the lane padding of the final projection.
    return out_p[:B, :OUT_DIM]


def init_params(key):
    """Deterministic parameter init mirroring nn.Linear shapes (out, in)."""
    k1, k2, k3, k4, k5, k6 = jax.random.split(key, 6)

    def uniform(k, shape, fan_in):
        bound = 1.0 / (fan_in ** 0.5)
        return jax.random.uniform(k, shape, jnp.float32, -bound, bound)

    w1 = uniform(k1, (HIDDEN_1, IN_DIM), IN_DIM)
    b1 = uniform(k2, (HIDDEN_1,), IN_DIM)
    w2 = uniform(k3, (HIDDEN_2, HIDDEN_1), HIDDEN_1)
    b2 = uniform(k4, (HIDDEN_2,), HIDDEN_1)
    w3 = uniform(k5, (OUT_DIM, HIDDEN_2), HIDDEN_2)
    b3 = uniform(k6, (OUT_DIM,), HIDDEN_2)
    return (w1, b1, w2, b2, w3, b3)


if __name__ == "__main__":
    key = jax.random.PRNGKey(0)
    kx, kp = jax.random.split(key)

    # Small batch, MNIST-like input: (B, 1, 28, 28) NCHW.
    B = 8
    x = jax.random.normal(kx, (B, 1, 28, 28), dtype=jnp.float32)
    params = init_params(kp)

    logits = net_forward(x, params)
    logits = jax.block_until_ready(logits)
    assert logits.shape == (B, OUT_DIM)
    assert bool(jnp.all(jnp.isfinite(logits)))

    # Reference 1: mirrors the kernel's mixed precision (bf16 inputs, f32 acc).
    w1, b1, w2, b2, w3, b3 = params
    xf = x.reshape(B, IN_DIM)
    h = jnp.dot(xf.astype(jnp.bfloat16), w1.T.astype(jnp.bfloat16),
                preferred_element_type=jnp.float32)
    h = jnp.maximum(h + b1, 0.0)
    h = jnp.dot(h.astype(jnp.bfloat16), w2.T.astype(jnp.bfloat16),
                preferred_element_type=jnp.float32)
    h = jnp.maximum(h + b2, 0.0)
    ref_bf16 = jnp.dot(h.astype(jnp.bfloat16), w3.T.astype(jnp.bfloat16),
                       preferred_element_type=jnp.float32) + b3
    assert jnp.allclose(logits, ref_bf16, atol=2e-2, rtol=2e-2)

    # Reference 2: pure f32 PyTorch-equivalent forward (loose tolerance since
    # the kernel intentionally runs the matmuls in bf16).
    ref_f32 = jnp.maximum(xf @ w1.T + b1, 0.0)
    ref_f32 = jnp.maximum(ref_f32 @ w2.T + b2, 0.0)
    ref_f32 = ref_f32 @ w3.T + b3
    assert jnp.allclose(logits, ref_f32, atol=2e-1, rtol=2e-1)

    print("KERNEL_OK")
</pallas_src>

<mosaic_0001>
module attributes {stable_mosaic.version = 11 : i64} {
  func.func @mlp_kernel(%arg0: i32, %arg1: memref<8x896xbf16, #tpu.memory_space<vmem>>, %arg2: memref<896x512xbf16, #tpu.memory_space<vmem>>, %arg3: memref<1x512xf32, #tpu.memory_space<vmem>>, %arg4: memref<512x512xbf16, #tpu.memory_space<vmem>>, %arg5: memref<1x512xf32, #tpu.memory_space<vmem>>, %arg6: memref<512x128xbf16, #tpu.memory_space<vmem>>, %arg7: memref<1x128xf32, #tpu.memory_space<vmem>>, %arg8: memref<8x128xf32, #tpu.memory_space<vmem>>) attributes {dimension_semantics = [#tpu.dimension_semantics<parallel>], iteration_bounds = array<i64: 1>, scalar_prefetch = 0 : i64, scratch_operands = 0 : i64, tpu.core_type = #tpu.core_type<tc>, window_params = [{transform_indices = @transform_0, window_bounds = array<i64: 8, 896>}, {pipeline_mode = #tpu.pipeline_mode<synchronous>, transform_indices = @transform_1, window_bounds = array<i64: 896, 512>}, {pipeline_mode = #tpu.pipeline_mode<synchronous>, transform_indices = @transform_2, window_bounds = array<i64: 1, 512>}, {pipeline_mode = #tpu.pipeline_mode<synchronous>, transform_indices = @transform_3, window_bounds = array<i64: 512, 512>}, {pipeline_mode = #tpu.pipeline_mode<synchronous>, transform_indices = @transform_4, window_bounds = array<i64: 1, 512>}, {pipeline_mode = #tpu.pipeline_mode<synchronous>, transform_indices = @transform_5, window_bounds = array<i64: 512, 128>}, {pipeline_mode = #tpu.pipeline_mode<synchronous>, transform_indices = @transform_6, window_bounds = array<i64: 1, 128>}, {transform_indices = @transform_7, window_bounds = array<i64: 8, 128>}]} {
    %c0 = arith.constant 0 : index
    %c0_0 = arith.constant 0 : index
    %0 = vector.load %arg1[%c0, %c0_0] : memref<8x896xbf16, #tpu.memory_space<vmem>>, vector<8x896xbf16>
    %c0_1 = arith.constant 0 : index
    %c0_2 = arith.constant 0 : index
    %1 = vector.load %arg2[%c0_1, %c0_2] : memref<896x512xbf16, #tpu.memory_space<vmem>>, vector<896x512xbf16>
    %cst = arith.constant dense<0.000000e+00> : vector<8x512xf32>
    %2 = tpu.matmul %0, %1, %cst {dimension_numbers = #tpu.dot_dimension_numbers<[1], [0], [0], [1], [0, 0, 1, 1], [], []>} : vector<8x896xbf16>, vector<896x512xbf16>, vector<8x512xf32> -> vector<8x512xf32>
    %c0_3 = arith.constant 0 : index
    %c0_4 = arith.constant 0 : index
    %3 = vector.load %arg3[%c0_3, %c0_4] : memref<1x512xf32, #tpu.memory_space<vmem>>, vector<1x512xf32>
    %4 = vector.broadcast %3 : vector<1x512xf32> to vector<8x512xf32>
    %5 = arith.addf %2, %4 : vector<8x512xf32>
    %cst_5 = arith.constant 0.000000e+00 : f32
    %6 = vector.broadcast %cst_5 : f32 to vector<8x512xf32>
    %7 = arith.maximumf %5, %6 : vector<8x512xf32>
    %8 = arith.truncf %7 : vector<8x512xf32> to vector<8x512xbf16>
    %c0_6 = arith.constant 0 : index
    %c0_7 = arith.constant 0 : index
    %9 = vector.load %arg4[%c0_6, %c0_7] : memref<512x512xbf16, #tpu.memory_space<vmem>>, vector<512x512xbf16>
    %cst_8 = arith.constant dense<0.000000e+00> : vector<8x512xf32>
    %10 = tpu.matmul %8, %9, %cst_8 {dimension_numbers = #tpu.dot_dimension_numbers<[1], [0], [0], [1], [0, 0, 1, 1], [], []>} : vector<8x512xbf16>, vector<512x512xbf16>, vector<8x512xf32> -> vector<8x512xf32>
    %c0_9 = arith.constant 0 : index
    %c0_10 = arith.constant 0 : index
    %11 = vector.load %arg5[%c0_9, %c0_10] : memref<1x512xf32, #tpu.memory_space<vmem>>, vector<1x512xf32>
    %12 = vector.broadcast %11 : vector<1x512xf32> to vector<8x512xf32>
    %13 = arith.addf %10, %12 : vector<8x512xf32>
    %cst_11 = arith.constant 0.000000e+00 : f32
    %14 = vector.broadcast %cst_11 : f32 to vector<8x512xf32>
    %15 = arith.maximumf %13, %14 : vector<8x512xf32>
    %16 = arith.truncf %15 : vector<8x512xf32> to vector<8x512xbf16>
    %c0_12 = arith.constant 0 : index
    %c0_13 = arith.constant 0 : index
    %17 = vector.load %arg6[%c0_12, %c0_13] : memref<512x128xbf16, #tpu.memory_space<vmem>>, vector<512x128xbf16>
    %cst_14 = arith.constant dense<0.000000e+00> : vector<8x128xf32>
    %18 = tpu.matmul %16, %17, %cst_14 {dimension_numbers = #tpu.dot_dimension_numbers<[1], [0], [0], [1], [0, 0, 1, 1], [], []>} : vector<8x512xbf16>, vector<512x128xbf16>, vector<8x128xf32> -> vector<8x128xf32>
    %c0_15 = arith.constant 0 : index
    %c0_16 = arith.constant 0 : index
    %19 = vector.load %arg7[%c0_15, %c0_16] : memref<1x128xf32, #tpu.memory_space<vmem>>, vector<1x128xf32>
    %20 = vector.broadcast %19 : vector<1x128xf32> to vector<8x128xf32>
    %21 = arith.addf %18, %20 : vector<8x128xf32>
    %c0_17 = arith.constant 0 : index
    %c0_18 = arith.constant 0 : index
    %22 = vector.load %arg8[%c0_17, %c0_18] : memref<8x128xf32, #tpu.memory_space<vmem>>, vector<8x128xf32>
    tpu.vector_store %arg8[%c0_17, %c0_18], %21 {strides = array<i32>} : memref<8x128xf32, #tpu.memory_space<vmem>>, vector<8x128xf32>,
    return
  }
  func.func @transform_0(%arg0: i32) -> (i32, i32) {
    %c0_i32 = arith.constant 0 : i32
    %c0_i32_0 = arith.constant 0 : i32
    return %arg0, %c0_i32 : i32, i32
  }
  func.func @transform_1(%arg0: i32) -> (i32, i32) {
    %c0_i32 = arith.constant 0 : i32
    %c0_i32_0 = arith.constant 0 : i32
    %c0_i32_1 = arith.constant 0 : i32
    return %c0_i32, %c0_i32_0 : i32, i32
  }
  func.func @transform_2(%arg0: i32) -> (i32, i32) {
    %c0_i32 = arith.constant 0 : i32
    %c0_i32_0 = arith.constant 0 : i32
    %c0_i32_1 = arith.constant 0 : i32
    return %c0_i32, %c0_i32_0 : i32, i32
  }
  func.func @transform_3(%arg0: i32) -> (i32, i32) {
    %c0_i32 = arith.constant 0 : i32
    %c0_i32_0 = arith.constant 0 : i32
    %c0_i32_1 = arith.constant 0 : i32
    return %c0_i32, %c0_i32_0 : i32, i32
  }
  func.func @transform_4(%arg0: i32) -> (i32, i32) {
    %c0_i32 = arith.constant 0 : i32
    %c0_i32_0 = arith.constant 0 : i32
    %c0_i32_1 = arith.constant 0 : i32
    return %c0_i32, %c0_i32_0 : i32, i32
  }
  func.func @transform_5(%arg0: i32) -> (i32, i32) {
    %c0_i32 = arith.constant 0 : i32
    %c0_i32_0 = arith.constant 0 : i32
    %c0_i32_1 = arith.constant 0 : i32
    return %c0_i32, %c0_i32_0 : i32, i32
  }
  func.func @transform_6(%arg0: i32) -> (i32, i32) {
    %c0_i32 = arith.constant 0 : i32
    %c0_i32_0 = arith.constant 0 : i32
    %c0_i32_1 = arith.constant 0 : i32
    return %c0_i32, %c0_i32_0 : i32, i32
  }
  func.func @transform_7(%arg0: i32) -> (i32, i32) {
    %c0_i32 = arith.constant 0 : i32
    %c0_i32_0 = arith.constant 0 : i32
    return %arg0, %c0_i32 : i32, i32
  }
}

</mosaic_0001>

<bundles_post_ra>
// kernel: net_forward.1
= control target key start
LH: loop header
LB: loop body
LE: loop exit
PB: predicated region body
PF: predicated region fallthrough
CT: control target
= control target key end

     0   :  { %s7473_s0 = inlined_call_operand.vmem [shape: bf16[8,896], index: 0, kind: input, shape index: {}]   ;;  %s7474_s1 = inlined_call_operand.vmem [shape: bf16[896,512], index: 1, kind: input, shape index: {}]   ;;  %s7475_s2 = inlined_call_operand.vmem [shape: f32[1,512], index: 2, kind: input, shape index: {}]   ;;  %s7476_s3 = inlined_call_operand.vmem [shape: bf16[512,512], index: 3, kind: input, shape index: {}]   ;;  %s7477_s4 = inlined_call_operand.vmem [shape: f32[1,512], index: 4, kind: input, shape index: {}]   ;;  %s7478_s5 = inlined_call_operand.vmem [shape: bf16[512,128], index: 5, kind: input, shape index: {}]   ;;  %s7479_s6 = inlined_call_operand.vmem [shape: f32[1,128], index: 6, kind: input, shape index: {}]   ;;  %s7480_s7 = inlined_call_operand.hbm [shape: f32[8,128], index: 7, kind: output, shape index: {}]  }
   0x1   :  { %v3219_v0 = vld [vmem:[%s7474_s1 + $0xe0] sm:$0xf]  ;;  %v4671_v1 = vld [vmem:[%s7474_s1 + $0xec] sm:$0xf0] }
   0x2   :  { %v3347_v2 = vld [vmem:[%s7474_s1 + $0x1e0] sm:$0xf]  ;;  %v3220_v3 = vor.u32 %v4671_v1, %v3219_v0  ;;  %v4703_v4 = vld [vmem:[%s7474_s1 + $0x1ec] sm:$0xf0] }
   0x3   :  { %v3475_v5 = vld [vmem:[%s7474_s1 + $0x2e0] sm:$0xf]  ;;  %v4735_v6 = vld [vmem:[%s7474_s1 + $0x2ec] sm:$0xf0]  ;;  %v3348_v7 = vor.u32 %v4703_v4, %v3347_v2 }
   0x4   :  { %v3476_v8 = vor.u32 %v4735_v6, %v3475_v5  ;;  %v3603_v9 = vld [vmem:[%s7474_s1 + $0x3e0] sm:$0xf]  ;;  %v4767_v10 = vld [vmem:[%s7474_s1 + $0x3ec] sm:$0xf0]  ;;  %1410 = vmatpush.bf16.msra.mxu0 %v3220_v3 }
   0x5   :  { %v3203_v11 = vld [vmem:[%s7474_s1 + $0xc0] sm:$0xf]  ;;  %v3604_v12 = vor.u32 %v4767_v10, %v3603_v9  ;;  %v4667_v13 = vld [vmem:[%s7474_s1 + $0xcc] sm:$0xf0]  ;;  %1423 = vmatpush.bf16.msra.mxu1 %v3348_v7 }
   0x6   :  { %v3331_v14 = vld [vmem:[%s7474_s1 + $0x1c0] sm:$0xf]  ;;  %v4699_v15 = vld [vmem:[%s7474_s1 + $0x1cc] sm:$0xf0]  ;;  %1436 = vmatpush.bf16.msra.mxu2 %v3476_v8  ;;  %v3204_v16 = vor.u32 %v4667_v13, %v3203_v11 }
   0x7   :  { %v3332_v17 = vor.u32 %v4699_v15, %v3331_v14  ;;  %v3459_v18 = vld [vmem:[%s7474_s1 + $0x2c0] sm:$0xf]  ;;  %v4731_v19 = vld [vmem:[%s7474_s1 + $0x2cc] sm:$0xf0]  ;;  %1449 = vmatpush.bf16.msra.mxu3 %v3604_v12 }
   0x8   :  { %v3587_v20 = vld [vmem:[%s7474_s1 + $0x3c0] sm:$0xf]  ;;  %v3460_v21 = vor.u32 %v4731_v19, %v3459_v18  ;;  %v4763_v22 = vld [vmem:[%s7474_s1 + $0x3cc] sm:$0xf0]  ;;  %1411 = vmatpush.bf16.msra.mxu0 %v3204_v16 }
   0x9   :  { %v3187_v23 = vld [vmem:[%s7474_s1 + $0xa0] sm:$0xf]  ;;  %v4663_v24 = vld [vmem:[%s7474_s1 + $0xac] sm:$0xf0]  ;;  %v3588_v25 = vor.u32 %v4763_v22, %v3587_v20  ;;  %1424 = vmatpush.bf16.msra.mxu1 %v3332_v17 }
   0xa   :  { %v3315_v26 = vld [vmem:[%s7474_s1 + $0x1a0] sm:$0xf]  ;;  %v4695_v27 = vld [vmem:[%s7474_s1 + $0x1ac] sm:$0xf0]  ;;  %v3188_v29 = vor.u32 %v4663_v24, %v3187_v23  ;;  %1437 = vmatpush.bf16.msra.mxu2 %v3460_v21 }
   0xb   :  { %v3443_v28 = vld [vmem:[%s7474_s1 + $0x2a0] sm:$0xf]  ;;  %v4727_v30 = vld [vmem:[%s7474_s1 + $0x2ac] sm:$0xf0]  ;;  %v3316_v33 = vor.u32 %v4695_v27, %v3315_v26  ;;  %1450 = vmatpush.bf16.msra.mxu3 %v3588_v25 }
   0xc   :  { %v3571_v31 = vld [vmem:[%s7474_s1 + $0x3a0] sm:$0xf]  ;;  %v4759_v32 = vld [vmem:[%s7474_s1 + $0x3ac] sm:$0xf0]  ;;  %v3444_v34 = vor.u32 %v4727_v30, %v3443_v28  ;;  %1412 = vmatpush.bf16.msra.mxu0 %v3188_v29 }
   0xd   :  { %v3171_v35 = vld [vmem:[%s7474_s1 + $0x80] sm:$0xf]  ;;  %v4659_v36 = vld [vmem:[%s7474_s1 + $0x8c] sm:$0xf0]  ;;  %v3572_v38 = vor.u32 %v4759_v32, %v3571_v31  ;;  %1425 = vmatpush.bf16.msra.mxu1 %v3316_v33 }
   0xe   :  { %v3299_v37 = vld [vmem:[%s7474_s1 + $0x180] sm:$0xf]  ;;  %v4691_v39 = vld [vmem:[%s7474_s1 + $0x18c] sm:$0xf0]  ;;  %v3172_v44 = vor.u32 %v4659_v36, %v3171_v35  ;;  %1438 = vmatpush.bf16.msra.mxu2 %v3444_v34 }
   0xf   :  { %v3427_v40 = vld [vmem:[%s7474_s1 + $0x280] sm:$0xf]  ;;  %v4723_v41 = vld [vmem:[%s7474_s1 + $0x28c] sm:$0xf0]  ;;  %v3300_v45 = vor.u32 %v4691_v39, %v3299_v37  ;;  %1451 = vmatpush.bf16.msra.mxu3 %v3572_v38  ;;  %v4669_v37 = vld [vmem:[%s7474_s1 + $0xe4] sm:$0xf] }
  0x10   :  { %v3555_v42 = vld [vmem:[%s7474_s1 + $0x380] sm:$0xf]  ;;  %v4755_v43 = vld [vmem:[%s7474_s1 + $0x38c] sm:$0xf0]  ;;  %v3428_v46 = vor.u32 %v4723_v41, %v3427_v40  ;;  %1413 = vmatpush.bf16.msra.mxu0 %v3172_v44  ;;  %v3221_v38 = vld [vmem:[%s7474_s1 + $0xf0] sm:$0xf0] }
  0x11   :  { %v3155_v47 = vld [vmem:[%s7474_s1 + $0x60] sm:$0xf]  ;;  %v4655_v48 = vld [vmem:[%s7474_s1 + $0x6c] sm:$0xf0]  ;;  %v3556_v50 = vor.u32 %v4755_v43, %v3555_v42  ;;  %1426 = vmatpush.bf16.msra.mxu1 %v3300_v45 }
  0x12   :  { %v3283_v49 = vld [vmem:[%s7474_s1 + $0x160] sm:$0xf]  ;;  %v4687_v51 = vld [vmem:[%s7474_s1 + $0x16c] sm:$0xf0]  ;;  %v3156_v56 = vor.u32 %v4655_v48, %v3155_v47  ;;  %1439 = vmatpush.bf16.msra.mxu2 %v3428_v46  ;;  %v3224_v46 = vor.u32 %v4669_v37, %v3221_v38 }
  0x13   :  { %v3411_v52 = vld [vmem:[%s7474_s1 + $0x260] sm:$0xf]  ;;  %v4719_v53 = vld [vmem:[%s7474_s1 + $0x26c] sm:$0xf0]  ;;  %v3284_v57 = vor.u32 %v4687_v51, %v3283_v49  ;;  %1452 = vmatpush.bf16.msra.mxu3 %v3556_v50  ;;  %v4665_v50 = vld [vmem:[%s7474_s1 + $0xc4] sm:$0xf] }
  0x14   :  { %v3539_v54 = vld [vmem:[%s7474_s1 + $0x360] sm:$0xf]  ;;  %v4751_v55 = vld [vmem:[%s7474_s1 + $0x36c] sm:$0xf0]  ;;  %v3412_v58 = vor.u32 %v4719_v53, %v3411_v52  ;;  %1414 = vmatpush.bf16.msra.mxu0 %v3156_v56  ;;  %v3205_v51 = vld [vmem:[%s7474_s1 + $0xd0] sm:$0xf0] }
  0x15   :  { %v3139_v59 = vld [vmem:[%s7474_s1 + $0x40] sm:$0xf]  ;;  %v4651_v60 = vld [vmem:[%s7474_s1 + $0x4c] sm:$0xf0]  ;;  %v3540_v62 = vor.u32 %v4751_v55, %v3539_v54  ;;  %1427 = vmatpush.bf16.msra.mxu1 %v3284_v57 }
  0x16   :  { %v3267_v61 = vld [vmem:[%s7474_s1 + $0x140] sm:$0xf]  ;;  %v4683_v63 = vld [vmem:[%s7474_s1 + $0x14c] sm:$0xf0]  ;;  %v3140_v4 = vor.u32 %v4651_v60, %v3139_v59  ;;  %1440 = vmatpush.bf16.msra.mxu2 %v3412_v58  ;;  %v3208_v59 = vor.u32 %v4665_v50, %v3205_v51 }
  0x17   :  { %v3395_v0 = vld [vmem:[%s7474_s1 + $0x240] sm:$0xf]  ;;  %v4715_v1 = vld [vmem:[%s7474_s1 + $0x24c] sm:$0xf0]  ;;  %v3268_v5 = vor.u32 %v4683_v63, %v3267_v61  ;;  %1453 = vmatpush.bf16.msra.mxu3 %v3540_v62  ;;  %v4661_v62 = vld [vmem:[%s7474_s1 + $0xa4] sm:$0xf] }
  0x18   :  { %v3523_v2 = vld [vmem:[%s7474_s1 + $0x340] sm:$0xf]  ;;  %v4747_v3 = vld [vmem:[%s7474_s1 + $0x34c] sm:$0xf0]  ;;  %v3396_v6 = vor.u32 %v4715_v1, %v3395_v0  ;;  %1415 = vmatpush.bf16.msra.mxu0 %v3140_v4  ;;  %v3189_v63 = vld [vmem:[%s7474_s1 + $0xb0] sm:$0xf0] }
  0x19   :  { %v3123_v7 = vld [vmem:[%s7474_s1 + $0x20] sm:$0xf]  ;;  %v4647_v8 = vld [vmem:[%s7474_s1 + $0x2c] sm:$0xf0]  ;;  %v3524_v10 = vor.u32 %v4747_v3, %v3523_v2  ;;  %1428 = vmatpush.bf16.msra.mxu1 %v3268_v5  ;;  %v28_v2 = vld [vmem:[%s7473_s0 + $0x8] sm:$0xff] }
  0x1a   :  { %v3251_v9 = vld [vmem:[%s7474_s1 + $0x120] sm:$0xf]  ;;  %v4679_v11 = vld [vmem:[%s7474_s1 + $0x12c] sm:$0xf0]  ;;  %v3124_v16 = vor.u32 %v4647_v8, %v3123_v7  ;;  %1441 = vmatpush.bf16.msra.mxu2 %v3396_v6  ;;  %v271_v8 = vunpack.c.l.b16 %v28_v2 }
  0x1b   :  { %v3379_v12 = vld [vmem:[%s7474_s1 + $0x220] sm:$0xf]  ;;  %v4711_v13 = vld [vmem:[%s7474_s1 + $0x22c] sm:$0xf0]  ;;  %v3252_v19 = vor.u32 %v4679_v11, %v3251_v9  ;;  %1454 = vmatpush.bf16.msra.mxu3 %v3524_v10  ;;  %v272_v10 = vunpack.c.h.b16 %v28_v2  ;;  %v3192_v11 = vor.u32 %v4661_v62, %v3189_v63 }
  0x1c   :  { %v3507_v14 = vld [vmem:[%s7474_s1 + $0x320] sm:$0xf]  ;;  %v4743_v15 = vld [vmem:[%s7474_s1 + $0x32c] sm:$0xf0]  ;;  %v3380_v20 = vor.u32 %v4711_v13, %v3379_v12  ;;  %1416 = vmatpush.bf16.msra.mxu0 %v3124_v16  ;;  %v4657_v16 = vld [vmem:[%s7474_s1 + $0x84] sm:$0xf] }
  0x1d   :  { %v3107_v17 = vld [vmem:[%s7474_s1] sm:$0xf]  ;;  %v4643_v18 = vld [vmem:[%s7474_s1 + $0xc] sm:$0xf0]  ;;  %v3508_v24 = vor.u32 %v4743_v15, %v3507_v14  ;;  %1429 = vmatpush.bf16.msra.mxu1 %v3252_v19 }
  0x1e   :  { %v3235_v21 = vld [vmem:[%s7474_s1 + $0x100] sm:$0xf]  ;;  %v4675_v22 = vld [vmem:[%s7474_s1 + $0x10c] sm:$0xf0]  ;;  %v3108_v31 = vor.u32 %v4643_v18, %v3107_v17  ;;  %1442 = vmatpush.bf16.msra.mxu2 %v3380_v20  ;;  %v3173_v17 = vld [vmem:[%s7474_s1 + $0x90] sm:$0xf0]  ;;  %v5389_v18 = vpack.c.b16 %v271_v8, %v271_v8  ;;  %v5393_v20 = vpack.c.b16 %v272_v10, %v272_v10 }
  0x1f   :  { %v3363_v23 = vld [vmem:[%s7474_s1 + $0x200] sm:$0xf]  ;;  %v4707_v25 = vld [vmem:[%s7474_s1 + $0x20c] sm:$0xf0]  ;;  %v3236_v35 = vor.u32 %v4675_v22, %v3235_v21  ;;  %1455 = vmatpush.bf16.msra.mxu3 %v3508_v24  ;;  %v4701_v8 = vld [vmem:[%s7474_s1 + $0x1e4] sm:$0xf] }
  0x20   :  { %v3491_v26 = vld [vmem:[%s7474_s1 + $0x300] sm:$0xf]  ;;  %v4739_v27 = vld [vmem:[%s7474_s1 + $0x30c] sm:$0xf0]  ;;  %v3364_v36 = vor.u32 %v4707_v25, %v3363_v23  ;;  %1417 = vmatpush.bf16.msra.mxu0 %v3108_v31  ;;  %v4733_v10 = vld [vmem:[%s7474_s1 + $0x2e4] sm:$0xf] }
  0x21   :  { %v3731_v28 = vld [vmem:[%s7474_s1 + $0x4e0] sm:$0xf]  ;;  %v4799_v29 = vld [vmem:[%s7474_s1 + $0x4ec] sm:$0xf0]  ;;  %v3492_v39 = vor.u32 %v4739_v27, %v3491_v26  ;;  %1430 = vmatpush.bf16.msra.mxu1 %v3236_v35 }
  0x22   :  { %v3859_v30 = vld [vmem:[%s7474_s1 + $0x5e0] sm:$0xf]  ;;  %v4831_v32 = vld [vmem:[%s7474_s1 + $0x5ec] sm:$0xf0]  ;;  %v3732_v40 = vor.u32 %v4799_v29, %v3731_v28  ;;  %1443 = vmatpush.bf16.msra.mxu2 %v3364_v36  ;;  %v3176_v28 = vor.u32 %v4657_v16, %v3173_v17 }
  0x23   :  { %v3987_v33 = vld [vmem:[%s7474_s1 + $0x6e0] sm:$0xf]  ;;  %v4863_v34 = vld [vmem:[%s7474_s1 + $0x6ec] sm:$0xf0]  ;;  %v3860_v41 = vor.u32 %v4831_v32, %v3859_v30  ;;  %1456 = vmatpush.bf16.msra.mxu3 %v3492_v39  ;;  %v4653_v32 = vld [vmem:[%s7474_s1 + $0x64] sm:$0xf] }
  0x24   :  { %v3988_v42 = vor.u32 %v4863_v34, %v3987_v33  ;;  %v3715_v43 = vld [vmem:[%s7474_s1 + $0x4c0] sm:$0xf]  ;;  %v4795_v44 = vld [vmem:[%s7474_s1 + $0x4cc] sm:$0xf0]  ;;  %1462 = vmatpush.bf16.msrb.mxu0 %v3732_v40  ;;  %v3157_v33 = vld [vmem:[%s7474_s1 + $0x70] sm:$0xf0] }
  0x25   :  { %v3843_v45 = vld [vmem:[%s7474_s1 + $0x5c0] sm:$0xf]  ;;  %v4827_v47 = vld [vmem:[%s7474_s1 + $0x5cc] sm:$0xf0]  ;;  %v3716_v52 = vor.u32 %v4795_v44, %v3715_v43  ;;  %1475 = vmatpush.bf16.msrb.mxu1 %v3860_v41  ;;  %1444 = vmatmul.bf16.vlgmr.msra.gmra.mxu2 %v5389_v18  ;;  %v3160_v40 = vor.u32 %v4653_v32, %v3157_v33  ;;  %v4649_v44 = vld [vmem:[%s7474_s1 + $0x44] sm:$0xf] }
  0x26   :  { %v3971_v48 = vld [vmem:[%s7474_s1 + $0x6c0] sm:$0xf]  ;;  %v4859_v49 = vld [vmem:[%s7474_s1 + $0x6cc] sm:$0xf0]  ;;  %1488 = vmatpush.bf16.msrb.mxu2 %v3988_v42  ;;  %v3844_v54 = vor.u32 %v4827_v47, %v3843_v45  ;;  %1457 = vmatmul.bf16.vlgmr.msra.gmra.mxu3 %v5393_v20  ;;  %v3141_v45 = vld [vmem:[%s7474_s1 + $0x50] sm:$0xf0] }
  0x27   :  { %v3699_v53 = vld [vmem:[%s7474_s1 + $0x4a0] sm:$0xf]  ;;  %v3972_v55 = vor.u32 %v4859_v49, %v3971_v48  ;;  %v4791_v56 = vld [vmem:[%s7474_s1 + $0x4ac] sm:$0xf0]  ;;  %1501 = vmatpush.bf16.msrb.mxu3 %v3224_v46  ;;  %v4729_v32 = vld [vmem:[%s7474_s1 + $0x2c4] sm:$0xf] }
  0x28   :  { %v3827_v57 = vld [vmem:[%s7474_s1 + $0x5a0] sm:$0xf]  ;;  %v4823_v58 = vld [vmem:[%s7474_s1 + $0x5ac] sm:$0xf0]  ;;  %1463 = vmatpush.bf16.msrb.mxu0 %v3716_v52  ;;  %v3700_v0 = vor.u32 %v4791_v56, %v3699_v53  ;;  %v3144_v52 = vor.u32 %v4649_v44, %v3141_v45  ;;  %v4645_v56 = vld [vmem:[%s7474_s1 + $0x24] sm:$0xf] }
  0x29   :  { %v3955_v60 = vld [vmem:[%s7474_s1 + $0x6a0] sm:$0xf]  ;;  %v4855_v61 = vld [vmem:[%s7474_s1 + $0x6ac] sm:$0xf0]  ;;  %v3828_v1 = vor.u32 %v4823_v58, %v3827_v57  ;;  %1476 = vmatpush.bf16.msrb.mxu1 %v3844_v54  ;;  %v3125_v57 = vld [vmem:[%s7474_s1 + $0x30] sm:$0xf0] }
  0x2a   :  { %v27_v3 = vld [vmem:[%s7473_s0] sm:$0xff]  ;;  %1489 = vmatpush.bf16.msrb.mxu2 %v3972_v55  ;;  %v3956_v4 = vor.u32 %v4855_v61, %v3955_v60  ;;  %v4787_v6 = vld [vmem:[%s7474_s1 + $0x48c] sm:$0xf0] }
  0x2b   :  { %v3683_v5 = vld [vmem:[%s7474_s1 + $0x480] sm:$0xf]  ;;  %v269_v9 = vunpack.c.l.b16 %v27_v3  ;;  %1502 = vmatpush.bf16.msrb.mxu3 %v3208_v59  ;;  %v4819_v12 = vld [vmem:[%s7474_s1 + $0x58c] sm:$0xf0]  ;;  %v270_v15 = vunpack.c.h.b16 %v27_v3  ;;  %v30_v3 = vld [vmem:[%s7473_s0 + $0x18] sm:$0xf] }
  0x2c   :  { %v3811_v7 = vld [vmem:[%s7474_s1 + $0x580] sm:$0xf]  ;;  %v4851_v14 = vld [vmem:[%s7474_s1 + $0x68c] sm:$0xf0]  ;;  %1464 = vmatpush.bf16.msrb.mxu0 %v3700_v0  ;;  %v3684_v21 = vor.u32 %v4787_v6, %v3683_v5  ;;  %v4641_v5 = vld [vmem:[%s7474_s1 + $0x4] sm:$0xf] }
  0x2d   :  { %v3939_v13 = vld [vmem:[%s7474_s1 + $0x680] sm:$0xf]  ;;  %v5391_v19 = vpack.c.b16 %v269_v9, %v269_v9  ;;  %v5395_v22 = vpack.c.b16 %v270_v15, %v270_v15  ;;  %1477 = vmatpush.bf16.msrb.mxu1 %v3828_v1  ;;  %v3812_v23 = vor.u32 %v4819_v12, %v3811_v7  ;;  %v4783_v26 = vld [vmem:[%s7474_s1 + $0x46c] sm:$0xf0]  ;;  %v3109_v6 = vld [vmem:[%s7474_s1 + $0x10] sm:$0xf0]  ;;  %v275_v15 = vunpack.c.l.b16 %v30_v3 }
  0x2e   :  { %1490 = vmatpush.bf16.msrb.mxu2 %v3956_v4  ;;  %v3940_v24 = vor.u32 %v4851_v14, %v3939_v13  ;;  %v3667_v25 = vld [vmem:[%s7474_s1 + $0x460] sm:$0xf]  ;;  %v4815_v29 = vld [vmem:[%s7474_s1 + $0x56c] sm:$0xf0]  ;;  %v3128_v4 = vor.u32 %v4645_v56, %v3125_v57  ;;  %v3349_v9 = vld [vmem:[%s7474_s1 + $0x1f0] sm:$0xf0] }
  0x2f   :  { %v3795_v27 = vld [vmem:[%s7474_s1 + $0x560] sm:$0xf]  ;;  %1503 = vmatpush.bf16.msrb.mxu3 %v3192_v11  ;;  %v4847_v31 = vld [vmem:[%s7474_s1 + $0x66c] sm:$0xf0]  ;;  %1418 = vmatmul.bf16.vlgmr.msra.gmra.mxu0 %v5391_v19  ;;  %v3668_v34 = vor.u32 %v4783_v26, %v3667_v25  ;;  %v3477_v12 = vld [vmem:[%s7474_s1 + $0x2f0] sm:$0xf0]  ;;  %v3112_v26 = vor.u32 %v4641_v5, %v3109_v6 }
  0x30   :  { %v3923_v30 = vld [vmem:[%s7474_s1 + $0x660] sm:$0xf]  ;;  %1465 = vmatpush.bf16.msrb.mxu0 %v3684_v21  ;;  %1431 = vmatmul.bf16.vlgmr.msra.gmra.mxu1 %v5395_v22  ;;  %v3796_v35 = vor.u32 %v4815_v29, %v3795_v27  ;;  %v4779_v38 = vld [vmem:[%s7474_s1 + $0x44c] sm:$0xf0]  ;;  %v4765_v13 = vld [vmem:[%s7474_s1 + $0x3e4] sm:$0xf]  ;;  %v3352_v27 = vor.u32 %v4701_v8, %v3349_v9 }
  0x31   :  { %1478 = vmatpush.bf16.msrb.mxu1 %v3812_v23  ;;  %v3924_v36 = vor.u32 %v4847_v31, %v3923_v30  ;;  %v3651_v37 = vld [vmem:[%s7474_s1 + $0x440] sm:$0xf]  ;;  %v4811_v41 = vld [vmem:[%s7474_s1 + $0x54c] sm:$0xf0]  ;;  %v3605_v14 = vld [vmem:[%s7474_s1 + $0x3f0] sm:$0xf0] }
  0x32   :  { %1491 = vmatpush.bf16.msrb.mxu2 %v3940_v24  ;;  %v3779_v39 = vld [vmem:[%s7474_s1 + $0x540] sm:$0xf]  ;;  %v4843_v43 = vld [vmem:[%s7474_s1 + $0x64c] sm:$0xf0]  ;;  %v3652_v46 = vor.u32 %v4779_v38, %v3651_v37  ;;  %v4797_v21 = vld [vmem:[%s7474_s1 + $0x4e4] sm:$0xf]  ;;  %v3608_v29 = vor.u32 %v4765_v13, %v3605_v14  ;;  %v5545_v37 = vpack.c.b16 %v275_v15, %v275_v15 }
  0x33   :  { %1504 = vmatpush.bf16.msrb.mxu3 %v3176_v28  ;;  %v3907_v42 = vld [vmem:[%s7474_s1 + $0x640] sm:$0xf]  ;;  %v3780_v47 = vor.u32 %v4811_v41, %v3779_v39  ;;  %v4775_v50 = vld [vmem:[%s7474_s1 + $0x42c] sm:$0xf0]  ;;  %v3733_v23 = vld [vmem:[%s7474_s1 + $0x4f0] sm:$0xf0]  ;;  %v3480_v28 = vor.u32 %v4733_v10, %v3477_v12 }
  0x34   :  { %1466 = vmatpush.bf16.msrb.mxu0 %v3668_v34  ;;  %v3908_v48 = vor.u32 %v4843_v43, %v3907_v42  ;;  %v3635_v49 = vld [vmem:[%s7474_s1 + $0x420] sm:$0xf]  ;;  %v4807_v53 = vld [vmem:[%s7474_s1 + $0x52c] sm:$0xf0]  ;;  %v4697_v30 = vld [vmem:[%s7474_s1 + $0x1c4] sm:$0xf]  ;;  %v3736_v33 = vor.u32 %v4797_v21, %v3733_v23 }
  0x35   :  { %1479 = vmatpush.bf16.msrb.mxu1 %v3796_v35  ;;  %v3763_v51 = vld [vmem:[%s7474_s1 + $0x520] sm:$0xf]  ;;  %v4839_v55 = vld [vmem:[%s7474_s1 + $0x62c] sm:$0xf0]  ;;  %v3636_v59 = vor.u32 %v4775_v50, %v3635_v49  ;;  %v3333_v31 = vld [vmem:[%s7474_s1 + $0x1d0] sm:$0xf0] }
  0x36   :  { %1492 = vmatpush.bf16.msrb.mxu2 %v3924_v36  ;;  %v3891_v54 = vld [vmem:[%s7474_s1 + $0x620] sm:$0xf]  ;;  %v4771_v60 = vld [vmem:[%s7474_s1 + $0x40c] sm:$0xf0]  ;;  %v3764_v63 = vor.u32 %v4807_v53, %v3763_v51  ;;  %v3461_v34 = vld [vmem:[%s7474_s1 + $0x2d0] sm:$0xf0]  ;;  %v3336_v42 = vor.u32 %v4697_v30, %v3333_v31 }
  0x37   :  { %1505 = vmatpush.bf16.msrb.mxu3 %v3160_v40  ;;  %v3619_v58 = vld [vmem:[%s7474_s1 + $0x400] sm:$0xf]  ;;  %v4803_v62 = vld [vmem:[%s7474_s1 + $0x50c] sm:$0xf0]  ;;  %v3892_v0 = vor.u32 %v4839_v55, %v3891_v54  ;;  %v4761_v35 = vld [vmem:[%s7474_s1 + $0x3c4] sm:$0xf]  ;;  %v3464_v43 = vor.u32 %v4729_v32, %v3461_v34 }
  0x38   :  { %1467 = vmatpush.bf16.msrb.mxu0 %v3652_v46  ;;  %v3747_v61 = vld [vmem:[%s7474_s1 + $0x500] sm:$0xf]  ;;  %v4835_v2 = vld [vmem:[%s7474_s1 + $0x60c] sm:$0xf0]  ;;  %v3620_v11 = vor.u32 %v4771_v60, %v3619_v58  ;;  %v3589_v36 = vld [vmem:[%s7474_s1 + $0x3d0] sm:$0xf0] }
  0x39   :  { %1480 = vmatpush.bf16.msrb.mxu1 %v3780_v47  ;;  %v3875_v1 = vld [vmem:[%s7474_s1 + $0x600] sm:$0xf]  ;;  %v29_v7 = vld [vmem:[%s7473_s0 + $0x10] sm:$0xff]  ;;  %v3748_v16 = vor.u32 %v4803_v62, %v3747_v61  ;;  %v4793_v38 = vld [vmem:[%s7474_s1 + $0x4c4] sm:$0xf]  ;;  %v3592_v44 = vor.u32 %v4761_v35, %v3589_v36 }
  0x3a   :  { %1493 = vmatpush.bf16.msrb.mxu2 %v3908_v48  ;;  %v3876_v17 = vor.u32 %v4835_v2, %v3875_v1  ;;  %v273_v24 = vunpack.c.l.b16 %v29_v7  ;;  %v274_v25 = vunpack.c.h.b16 %v29_v7  ;;  %v3717_v39 = vld [vmem:[%s7474_s1 + $0x4d0] sm:$0xf0]  ;;  %v4693_v45 = vld [vmem:[%s7474_s1 + $0x1a4] sm:$0xf] }
  0x3b   :  { %1506 = vmatpush.bf16.msrb.mxu3 %v3144_v52  ;;  %v3317_v46 = vld [vmem:[%s7474_s1 + $0x1b0] sm:$0xf0]  ;;  %v4725_v47 = vld [vmem:[%s7474_s1 + $0x2a4] sm:$0xf]  ;;  %v3720_v48 = vor.u32 %v4793_v38, %v3717_v39 }
  0x3c   :  { %1468 = vmatpush.bf16.msrb.mxu0 %v3636_v59  ;;  %v5553_v40 = vpack.c.b16 %v273_v24, %v273_v24  ;;  %v5555_v41 = vpack.c.b16 %v274_v25, %v274_v25  ;;  %v3445_v49 = vld [vmem:[%s7474_s1 + $0x2b0] sm:$0xf0]  ;;  %v4757_v50 = vld [vmem:[%s7474_s1 + $0x3a4] sm:$0xf]  ;;  %v3320_v54 = vor.u32 %v4693_v45, %v3317_v46 }
  0x3d   :  { %1481 = vmatpush.bf16.msrb.mxu1 %v3764_v63  ;;  %v3573_v51 = vld [vmem:[%s7474_s1 + $0x3b0] sm:$0xf0]  ;;  %v4789_v52 = vld [vmem:[%s7474_s1 + $0x4a4] sm:$0xf]  ;;  %v3448_v55 = vor.u32 %v4725_v47, %v3445_v49 }
  0x3e   :  { %1494 = vmatpush.bf16.msrb.mxu2 %v3892_v0  ;;  %v3701_v53 = vld [vmem:[%s7474_s1 + $0x4b0] sm:$0xf0]  ;;  %v3576_v56 = vor.u32 %v4757_v50, %v3573_v51  ;;  %v4689_v57 = vld [vmem:[%s7474_s1 + $0x184] sm:$0xf] }
  0x3f   :  { %1507 = vmatpush.bf16.msrb.mxu3 %v3128_v4  ;;  %v3301_v58 = vld [vmem:[%s7474_s1 + $0x190] sm:$0xf0]  ;;  %v4721_v59 = vld [vmem:[%s7474_s1 + $0x284] sm:$0xf]  ;;  %v3704_v60 = vor.u32 %v4789_v52, %v3701_v53 }
  0x40   :  { %1469 = vmatpush.bf16.msrb.mxu0 %v3620_v11  ;;  %v3429_v61 = vld [vmem:[%s7474_s1 + $0x290] sm:$0xf0]  ;;  %v4753_v62 = vld [vmem:[%s7474_s1 + $0x384] sm:$0xf]  ;;  %v3304_v2 = vor.u32 %v4689_v57, %v3301_v58 }
  0x41   :  { %1482 = vmatpush.bf16.msrb.mxu1 %v3748_v16  ;;  %v3557_v63 = vld [vmem:[%s7474_s1 + $0x390] sm:$0xf0]  ;;  %v4785_v0 = vld [vmem:[%s7474_s1 + $0x484] sm:$0xf]  ;;  %v3432_v3 = vor.u32 %v4721_v59, %v3429_v61 }
  0x42   :  { %1495 = vmatpush.bf16.msrb.mxu2 %v3876_v17  ;;  %v3685_v1 = vld [vmem:[%s7474_s1 + $0x490] sm:$0xf0]  ;;  %v3560_v4 = vor.u32 %v4753_v62, %v3557_v63  ;;  %v4685_v5 = vld [vmem:[%s7474_s1 + $0x164] sm:$0xf] }
  0x43   :  { %1508 = vmatpush.bf16.msrb.mxu3 %v3112_v26  ;;  %1470 = vmatmul.bf16.vlgmr.msrb.gmra.mxu0 %v5553_v40  ;;  %v3285_v6 = vld [vmem:[%s7474_s1 + $0x170] sm:$0xf0]  ;;  %v4717_v7 = vld [vmem:[%s7474_s1 + $0x264] sm:$0xf]  ;;  %v3688_v8 = vor.u32 %v4785_v0, %v3685_v1 }
  0x44   :  { %1514 = vmatpush.bf16.msra.mxu0 %v3352_v27  ;;  %1483 = vmatmul.bf16.vlgmr.msrb.gmra.mxu1 %v5555_v41  ;;  %v3413_v9 = vld [vmem:[%s7474_s1 + $0x270] sm:$0xf0]  ;;  %v4749_v10 = vld [vmem:[%s7474_s1 + $0x364] sm:$0xf]  ;;  %v3288_v14 = vor.u32 %v4685_v5, %v3285_v6 }
  0x45   :  { %1527 = vmatpush.bf16.msra.mxu1 %v3480_v28  ;;  %1496 = vmatmul.bf16.vlgmr.msrb.gmra.mxu2 %v5545_v37  ;;  %v3541_v11 = vld [vmem:[%s7474_s1 + $0x370] sm:$0xf0]  ;;  %v4781_v12 = vld [vmem:[%s7474_s1 + $0x464] sm:$0xf]  ;;  %v3416_v15 = vor.u32 %v4717_v7, %v3413_v9 }
  0x46   :  { %1540 = vmatpush.bf16.msra.mxu2 %v3608_v29  ;;  %1509 = vmatmul.bf16.vlgmr.msrb.gmra.mxu3 %v5391_v19  ;;  %v3669_v13 = vld [vmem:[%s7474_s1 + $0x470] sm:$0xf0]  ;;  %v3544_v16 = vor.u32 %v4749_v10, %v3541_v11  ;;  %v4681_v17 = vld [vmem:[%s7474_s1 + $0x144] sm:$0xf] }
  0x47   :  { %1553 = vmatpush.bf16.msra.mxu3 %v3736_v33  ;;  %v3269_v21 = vld [vmem:[%s7474_s1 + $0x150] sm:$0xf0]  ;;  %v4713_v23 = vld [vmem:[%s7474_s1 + $0x244] sm:$0xf]  ;;  %v3672_v24 = vor.u32 %v4781_v12, %v3669_v13 }
  0x48   :  { %1515 = vmatpush.bf16.msra.mxu0 %v3336_v42  ;;  %v3397_v25 = vld [vmem:[%s7474_s1 + $0x250] sm:$0xf0]  ;;  %v4745_v26 = vld [vmem:[%s7474_s1 + $0x344] sm:$0xf]  ;;  %v3272_v30 = vor.u32 %v4681_v17, %v3269_v21 }
  0x49   :  { %1528 = vmatpush.bf16.msra.mxu1 %v3464_v43  ;;  %v3525_v27 = vld [vmem:[%s7474_s1 + $0x350] sm:$0xf0]  ;;  %v4777_v28 = vld [vmem:[%s7474_s1 + $0x444] sm:$0xf] }
  0x4a   :  { %1541 = vmatpush.bf16.msra.mxu2 %v3592_v44  ;;  %v3653_v29 = vld [vmem:[%s7474_s1 + $0x450] sm:$0xf0] }
  0x4b   :  { %1554 = vmatpush.bf16.msra.mxu3 %v3720_v48 }
  0x4c   :  { %1516 = vmatpush.bf16.msra.mxu0 %v3320_v54 }
  0x4d   :  { %1529 = vmatpush.bf16.msra.mxu1 %v3448_v55 }
  0x4e   :  { %1542 = vmatpush.bf16.msra.mxu2 %v3576_v56 }
  0x4f   :  { %1555 = vmatpush.bf16.msra.mxu3 %v3704_v60 }
  0x50   :  { %1517 = vmatpush.bf16.msra.mxu0 %v3304_v2 }
  0x51   :  { %1530 = vmatpush.bf16.msra.mxu1 %v3432_v3 }
  0x52   :  { %1543 = vmatpush.bf16.msra.mxu2 %v3560_v4 }
  0x53   :  { %1556 = vmatpush.bf16.msra.mxu3 %v3688_v8 }
  0x54   :  { %1518 = vmatpush.bf16.msra.mxu0 %v3288_v14 }
  0x55   :  { %12 = vsyncpa [#allocation3], 0  ;;  %1531 = vmatpush.bf16.msra.mxu1 %v3416_v15  ;;  %v3400_v31 = vor.u32 %v4713_v23, %v3397_v25  ;;  %v3528_v32 = vor.u32 %v4745_v26, %v3525_v27  ;;  %v4677_v33 = vld [vmem:[%s7474_s1 + $0x124] sm:$0xf]  ;;  %v3253_v34 = vld [vmem:[%s7474_s1 + $0x130] sm:$0xf0]  ;;  %v3656_v36 = vor.u32 %v4777_v28, %v3653_v29 }
  0x56   :  { %1544 = vmatpush.bf16.msra.mxu2 %v3544_v16  ;;  %v4709_v35 = vld [vmem:[%s7474_s1 + $0x224] sm:$0xf]  ;;  %v3381_v38 = vld [vmem:[%s7474_s1 + $0x230] sm:$0xf0]  ;;  %v3256_v45 = vor.u32 %v4677_v33, %v3253_v34  ;;  %v3227_v62 = vld [vmem:[%s7474_s1 + $0xe8] sm:$0xf] }
  0x57   :  { %1557 = vmatpush.bf16.msra.mxu3 %v3672_v24  ;;  %v4741_v39 = vld [vmem:[%s7474_s1 + $0x324] sm:$0xf]  ;;  %v3509_v42 = vld [vmem:[%s7474_s1 + $0x330] sm:$0xf0]  ;;  %v3384_v48 = vor.u32 %v4709_v35, %v3381_v38  ;;  %v4672_v63 = vld [vmem:[%s7474_s1 + $0xf4] sm:$0xf0] }
  0x58   :  { %v4773_v43 = vld [vmem:[%s7474_s1 + $0x424] sm:$0xf]  ;;  %v3637_v44 = vld [vmem:[%s7474_s1 + $0x430] sm:$0xf0]  ;;  %1519 = vmatpush.bf16.msra.mxu0 %v3272_v30  ;;  %v3512_v49 = vor.u32 %v4741_v39, %v3509_v42  ;;  %v3355_v2 = vld [vmem:[%s7474_s1 + $0x1e8] sm:$0xf]  ;;  %v3228_v7 = vor.u32 %v4672_v63, %v3227_v62 }
  0x59   :  { %v4673_v46 = vld [vmem:[%s7474_s1 + $0x104] sm:$0xf]  ;;  %v3237_v47 = vld [vmem:[%s7474_s1 + $0x110] sm:$0xf0]  ;;  %1532 = vmatpush.bf16.msra.mxu1 %v3400_v31  ;;  %v3640_v53 = vor.u32 %v4773_v43, %v3637_v44  ;;  %v4704_v3 = vld [vmem:[%s7474_s1 + $0x1f4] sm:$0xf0] }
  0x5a   :  { %1545 = vmatpush.bf16.msra.mxu2 %v3528_v32  ;;  %v4705_v50 = vld [vmem:[%s7474_s1 + $0x204] sm:$0xf]  ;;  %v3365_v51 = vld [vmem:[%s7474_s1 + $0x210] sm:$0xf0]  ;;  %v3240_v60 = vor.u32 %v4673_v46, %v3237_v47  ;;  %v3356_v11 = vor.u32 %v4704_v3, %v3355_v2  ;;  %v3211_v13 = vld [vmem:[%s7474_s1 + $0xc8] sm:$0xf] }
  0x5b   :  { %v4737_v52 = vld [vmem:[%s7474_s1 + $0x304] sm:$0xf]  ;;  %1558 = vmatpush.bf16.msra.mxu3 %v3656_v36  ;;  %v3493_v54 = vld [vmem:[%s7474_s1 + $0x310] sm:$0xf0]  ;;  %v3368_v0 = vor.u32 %v4705_v50, %v3365_v51  ;;  %v4668_v14 = vld [vmem:[%s7474_s1 + $0xd4] sm:$0xf0] }
  0x5c   :  { %v4769_v55 = vld [vmem:[%s7474_s1 + $0x404] sm:$0xf]  ;;  %v3621_v56 = vld [vmem:[%s7474_s1 + $0x410] sm:$0xf0]  ;;  %1520 = vmatpush.bf16.msra.mxu0 %v3256_v45  ;;  %v3496_v1 = vor.u32 %v4737_v52, %v3493_v54  ;;  %v3339_v15 = vld [vmem:[%s7474_s1 + $0x1c8] sm:$0xf]  ;;  %v3212_v23 = vor.u32 %v4668_v14, %v3211_v13 }
  0x5d   :  { %v4829_v57 = vld [vmem:[%s7474_s1 + $0x5e4] sm:$0xf]  ;;  %v3861_v58 = vld [vmem:[%s7474_s1 + $0x5f0] sm:$0xf0]  ;;  %1533 = vmatpush.bf16.msra.mxu1 %v3384_v48  ;;  %v3624_v4 = vor.u32 %v4769_v55, %v3621_v56  ;;  %v4700_v16 = vld [vmem:[%s7474_s1 + $0x1d4] sm:$0xf0] }
  0x5e   :  { %v4861_v59 = vld [vmem:[%s7474_s1 + $0x6e4] sm:$0xf]  ;;  %v3989_v61 = vld [vmem:[%s7474_s1 + $0x6f0] sm:$0xf0]  ;;  %1546 = vmatpush.bf16.msra.mxu2 %v3512_v49  ;;  %v3864_v5 = vor.u32 %v4829_v57, %v3861_v58  ;;  %v3340_v27 = vor.u32 %v4700_v16, %v3339_v15  ;;  %v3195_v29 = vld [vmem:[%s7474_s1 + $0xa8] sm:$0xf] }
  0x5f   :  { %1559 = vmatpush.bf16.msra.mxu3 %v3640_v53  ;;  %v3992_v6 = vor.u32 %v4861_v59, %v3989_v61  ;;  %v4825_v8 = vld [vmem:[%s7474_s1 + $0x5c4] sm:$0xf]  ;;  %v3845_v9 = vld [vmem:[%s7474_s1 + $0x5d0] sm:$0xf0]  ;;  %v4664_v30 = vld [vmem:[%s7474_s1 + $0xb4] sm:$0xf0] }
  0x60   :  { %v4857_v10 = vld [vmem:[%s7474_s1 + $0x6c4] sm:$0xf]  ;;  %1521 = vmatpush.bf16.msra.mxu0 %v3240_v60  ;;  %v3973_v12 = vld [vmem:[%s7474_s1 + $0x6d0] sm:$0xf0]  ;;  %v3848_v17 = vor.u32 %v4825_v8, %v3845_v9  ;;  %v3323_v31 = vld [vmem:[%s7474_s1 + $0x1a8] sm:$0xf]  ;;  %v3196_v35 = vor.u32 %v4664_v30, %v3195_v29 }
  0x61   :  { %1534 = vmatpush.bf16.msra.mxu1 %v3368_v0  ;;  %v3976_v21 = vor.u32 %v4857_v10, %v3973_v12  ;;  %v4821_v24 = vld [vmem:[%s7474_s1 + $0x5a4] sm:$0xf]  ;;  %v3829_v25 = vld [vmem:[%s7474_s1 + $0x5b0] sm:$0xf0]  ;;  %v4696_v32 = vld [vmem:[%s7474_s1 + $0x1b4] sm:$0xf0] }
  0x62   :  { %1547 = vmatpush.bf16.msra.mxu2 %v3496_v1  ;;  %v4853_v26 = vld [vmem:[%s7474_s1 + $0x6a4] sm:$0xf]  ;;  %v3957_v28 = vld [vmem:[%s7474_s1 + $0x6b0] sm:$0xf0]  ;;  %v3832_v33 = vor.u32 %v4821_v24, %v3829_v25  ;;  %v3324_v42 = vor.u32 %v4696_v32, %v3323_v31  ;;  %v3179_v44 = vld [vmem:[%s7474_s1 + $0x88] sm:$0xf] }
  0x63   :  { %1560 = vmatpush.bf16.msra.mxu3 %v3624_v4  ;;  %1522 = vmatmul.bf16.vlgmr.msra.gmra.mxu0 %v5395_v22  ;;  %v3960_v34 = vor.u32 %v4853_v26, %v3957_v28  ;;  %v4817_v36 = vld [vmem:[%s7474_s1 + $0x584] sm:$0xf]  ;;  %v3813_v38 = vld [vmem:[%s7474_s1 + $0x590] sm:$0xf0]  ;;  %v4660_v45 = vld [vmem:[%s7474_s1 + $0x94] sm:$0xf0] }
  0x64   :  { %1566 = vmatpush.bf16.msrb.mxu0 %v3864_v5  ;;  %1535 = vmatmul.bf16.vlgmr.msra.gmra.mxu1 %v5389_v18  ;;  %v4849_v39 = vld [vmem:[%s7474_s1 + $0x684] sm:$0xf]  ;;  %v3941_v43 = vld [vmem:[%s7474_s1 + $0x690] sm:$0xf0]  ;;  %v3307_v46 = vld [vmem:[%s7474_s1 + $0x188] sm:$0xf]  ;;  %v3816_v48 = vor.u32 %v4817_v36, %v3813_v38  ;;  %v3180_v50 = vor.u32 %v4660_v45, %v3179_v44 }
  0x65   :  { %1579 = vmatpush.bf16.msrb.mxu1 %v3992_v6  ;;  %1548 = vmatmul.bf16.vlgmr.msra.gmra.mxu2 %v5393_v20  ;;  %v4692_v47 = vld [vmem:[%s7474_s1 + $0x194] sm:$0xf0]  ;;  %v3944_v49 = vor.u32 %v4849_v39, %v3941_v43  ;;  %v4813_v51 = vld [vmem:[%s7474_s1 + $0x564] sm:$0xf]  ;;  %v3797_v52 = vld [vmem:[%s7474_s1 + $0x570] sm:$0xf0] }
  0x66   :  { %1592 = vmatpush.bf16.msrb.mxu2 %v3228_v7  ;;  %1561 = vmatmul.bf16.vlgmr.msra.gmra.mxu3 %v5553_v40  ;;  %v4845_v53 = vld [vmem:[%s7474_s1 + $0x664] sm:$0xf]  ;;  %v3308_v54 = vor.u32 %v4692_v47, %v3307_v46  ;;  %v3925_v55 = vld [vmem:[%s7474_s1 + $0x670] sm:$0xf0]  ;;  %v3163_v56 = vld [vmem:[%s7474_s1 + $0x68] sm:$0xf]  ;;  %v3800_v60 = vor.u32 %v4813_v51, %v3797_v52 }
  0x67   :  { %1605 = vmatpush.bf16.msrb.mxu3 %v3356_v11  ;;  %v4656_v57 = vld [vmem:[%s7474_s1 + $0x74] sm:$0xf0]  ;;  %v3291_v58 = vld [vmem:[%s7474_s1 + $0x168] sm:$0xf]  ;;  %v3928_v61 = vor.u32 %v4845_v53, %v3925_v55  ;;  %v4809_v63 = vld [vmem:[%s7474_s1 + $0x544] sm:$0xf] }
  0x68   :  { %1567 = vmatpush.bf16.msrb.mxu0 %v3848_v17  ;;  %v4688_v59 = vld [vmem:[%s7474_s1 + $0x174] sm:$0xf0]  ;;  %v3164_v62 = vor.u32 %v4656_v57, %v3163_v56  ;;  %v3781_v0 = vld [vmem:[%s7474_s1 + $0x550] sm:$0xf0]  ;;  %v4841_v1 = vld [vmem:[%s7474_s1 + $0x644] sm:$0xf] }
  0x69   :  { %1580 = vmatpush.bf16.msrb.mxu1 %v3976_v21  ;;  %v3292_v2 = vor.u32 %v4688_v59, %v3291_v58  ;;  %v3909_v3 = vld [vmem:[%s7474_s1 + $0x650] sm:$0xf0]  ;;  %v3147_v4 = vld [vmem:[%s7474_s1 + $0x48] sm:$0xf]  ;;  %v4652_v5 = vld [vmem:[%s7474_s1 + $0x54] sm:$0xf0]  ;;  %v3784_v8 = vor.u32 %v4809_v63, %v3781_v0 }
  0x6a   :  { %1593 = vmatpush.bf16.msrb.mxu2 %v3212_v23  ;;  %v3275_v6 = vld [vmem:[%s7474_s1 + $0x148] sm:$0xf]  ;;  %v4684_v7 = vld [vmem:[%s7474_s1 + $0x154] sm:$0xf0]  ;;  %v3912_v9 = vor.u32 %v4841_v1, %v3909_v3  ;;  %v3148_v10 = vor.u32 %v4652_v5, %v3147_v4  ;;  %v4805_v11 = vld [vmem:[%s7474_s1 + $0x524] sm:$0xf] }
  0x6b   :  { %1606 = vmatpush.bf16.msrb.mxu3 %v3340_v27  ;;  %v3765_v12 = vld [vmem:[%s7474_s1 + $0x530] sm:$0xf0]  ;;  %v4837_v13 = vld [vmem:[%s7474_s1 + $0x624] sm:$0xf]  ;;  %v3276_v14 = vor.u32 %v4684_v7, %v3275_v6  ;;  %v3131_v16 = vld [vmem:[%s7474_s1 + $0x28] sm:$0xf] }
  0x6c   :  { %1568 = vmatpush.bf16.msrb.mxu0 %v3832_v33  ;;  %v3893_v15 = vld [vmem:[%s7474_s1 + $0x630] sm:$0xf0]  ;;  %v4648_v17 = vld [vmem:[%s7474_s1 + $0x34] sm:$0xf0]  ;;  %v3259_v21 = vld [vmem:[%s7474_s1 + $0x128] sm:$0xf]  ;;  %v3768_v24 = vor.u32 %v4805_v11, %v3765_v12 }
  0x6d   :  { %1581 = vmatpush.bf16.msrb.mxu1 %v3960_v34  ;;  %v4680_v23 = vld [vmem:[%s7474_s1 + $0x134] sm:$0xf0]  ;;  %v4801_v25 = vld [vmem:[%s7474_s1 + $0x504] sm:$0xf]  ;;  %v3749_v26 = vld [vmem:[%s7474_s1 + $0x510] sm:$0xf0]  ;;  %v3896_v27 = vor.u32 %v4837_v13, %v3893_v15  ;;  %v3132_v28 = vor.u32 %v4648_v17, %v3131_v16 }
  0x6e   :  { %1594 = vmatpush.bf16.msrb.mxu2 %v3196_v35  ;;  %v4833_v29 = vld [vmem:[%s7474_s1 + $0x604] sm:$0xf]  ;;  %v3877_v30 = vld [vmem:[%s7474_s1 + $0x610] sm:$0xf0]  ;;  %v3115_v31 = vld [vmem:[%s7474_s1 + $0x8] sm:$0xf]  ;;  %v3260_v32 = vor.u32 %v4680_v23, %v3259_v21 }
  0x6f   :  { %1607 = vmatpush.bf16.msrb.mxu3 %v3324_v42  ;;  %v4644_v33 = vld [vmem:[%s7474_s1 + $0x14] sm:$0xf0]  ;;  %v3243_v34 = vld [vmem:[%s7474_s1 + $0x108] sm:$0xf]  ;;  %v3752_v42 = vor.u32 %v4801_v25, %v3749_v26  ;;  %v3880_v46 = vor.u32 %v4833_v29, %v3877_v30  ;;  %s5054_s21 = smov [#allocation2]   ;;  %s3096_s25 = sshll.u32 %s7480_s7, 4  ;;  %s3097_s25 = int_to_ptr.hbm [resolvable:$true] %s3096_s25 }
  0x70   :  { %1569 = vmatpush.bf16.msrb.mxu0 %v3816_v48  ;;  %v4676_v35 = vld [vmem:[%s7474_s1 + $0x114] sm:$0xf0]  ;;  %v3483_v36 = vld [vmem:[%s7474_s1 + $0x2e8] sm:$0xf]  ;;  %v3116_v47 = vor.u32 %v4644_v33, %v3115_v31  ;;  %s3094_s22 = sshll.u32 %s5054_s21, 4  ;;  %s3095_s22 = int_to_ptr.vmem [resolvable:$true] %s3094_s22 }
  0x71   :  { %1582 = vmatpush.bf16.msrb.mxu1 %v3944_v49  ;;  %v4736_v38 = vld [vmem:[%s7474_s1 + $0x2f4] sm:$0xf0]  ;;  %v3611_v39 = vld [vmem:[%s7474_s1 + $0x3e8] sm:$0xf] }
  0x72   :  { %1595 = vmatpush.bf16.msrb.mxu2 %v3180_v50  ;;  %v4768_v43 = vld [vmem:[%s7474_s1 + $0x3f4] sm:$0xf0]  ;;  %v3739_v44 = vld [vmem:[%s7474_s1 + $0x4e8] sm:$0xf]  ;;  %v3244_v50 = vor.u32 %v4676_v35, %v3243_v34  ;;  %v3484_v51 = vor.u32 %v4736_v38, %v3483_v36 }
  0x73   :  { %1608 = vmatpush.bf16.msrb.mxu3 %v3308_v54  ;;  %v4800_v45 = vld [vmem:[%s7474_s1 + $0x4f4] sm:$0xf0]  ;;  %v3867_v48 = vld [vmem:[%s7474_s1 + $0x5e8] sm:$0xf]  ;;  %v3612_v52 = vor.u32 %v4768_v43, %v3611_v39 }
  0x74   :  { %1570 = vmatpush.bf16.msrb.mxu0 %v3800_v60  ;;  %v4832_v49 = vld [vmem:[%s7474_s1 + $0x5f4] sm:$0xf0]  ;;  %v3740_v53 = vor.u32 %v4800_v45, %v3739_v44  ;;  %v3467_v54 = vld [vmem:[%s7474_s1 + $0x2c8] sm:$0xf] }
  0x75   :  { %1583 = vmatpush.bf16.msrb.mxu1 %v3928_v61  ;;  %v4732_v55 = vld [vmem:[%s7474_s1 + $0x2d4] sm:$0xf0]  ;;  %v3595_v56 = vld [vmem:[%s7474_s1 + $0x3c8] sm:$0xf]  ;;  %v3868_v57 = vor.u32 %v4832_v49, %v3867_v48 }
  0x76   :  { %1596 = vmatpush.bf16.msrb.mxu2 %v3164_v62  ;;  %v4764_v58 = vld [vmem:[%s7474_s1 + $0x3d4] sm:$0xf0]  ;;  %v3723_v59 = vld [vmem:[%s7474_s1 + $0x4c8] sm:$0xf]  ;;  %v3468_v63 = vor.u32 %v4732_v55, %v3467_v54 }
  0x77   :  { %1609 = vmatpush.bf16.msrb.mxu3 %v3292_v2  ;;  %v4796_v60 = vld [vmem:[%s7474_s1 + $0x4d4] sm:$0xf0]  ;;  %v3851_v61 = vld [vmem:[%s7474_s1 + $0x5c8] sm:$0xf]  ;;  %v3596_v0 = vor.u32 %v4764_v58, %v3595_v56 }
  0x78   :  { %1571 = vmatpush.bf16.msrb.mxu0 %v3784_v8  ;;  %v4828_v62 = vld [vmem:[%s7474_s1 + $0x5d4] sm:$0xf0]  ;;  %v3724_v1 = vor.u32 %v4796_v60, %v3723_v59  ;;  %v3451_v2 = vld [vmem:[%s7474_s1 + $0x2a8] sm:$0xf] }
  0x79   :  { %1584 = vmatpush.bf16.msrb.mxu1 %v3912_v9  ;;  %v4728_v3 = vld [vmem:[%s7474_s1 + $0x2b4] sm:$0xf0]  ;;  %v3579_v4 = vld [vmem:[%s7474_s1 + $0x3a8] sm:$0xf]  ;;  %v3852_v5 = vor.u32 %v4828_v62, %v3851_v61 }
  0x7a   :  { %1597 = vmatpush.bf16.msrb.mxu2 %v3148_v10  ;;  %v4760_v6 = vld [vmem:[%s7474_s1 + $0x3b4] sm:$0xf0]  ;;  %v3707_v7 = vld [vmem:[%s7474_s1 + $0x4a8] sm:$0xf]  ;;  %v3452_v11 = vor.u32 %v4728_v3, %v3451_v2 }
  0x7b   :  { %1610 = vmatpush.bf16.msrb.mxu3 %v3276_v14  ;;  %v4792_v8 = vld [vmem:[%s7474_s1 + $0x4b4] sm:$0xf0]  ;;  %v3835_v9 = vld [vmem:[%s7474_s1 + $0x5a8] sm:$0xf]  ;;  %v3580_v12 = vor.u32 %v4760_v6, %v3579_v4 }
  0x7c   :  { %1572 = vmatpush.bf16.msrb.mxu0 %v3768_v24  ;;  %v4824_v10 = vld [vmem:[%s7474_s1 + $0x5b4] sm:$0xf0]  ;;  %v3708_v13 = vor.u32 %v4792_v8, %v3707_v7  ;;  %v3435_v14 = vld [vmem:[%s7474_s1 + $0x288] sm:$0xf] }
  0x7d   :  { %1585 = vmatpush.bf16.msrb.mxu1 %v3896_v27  ;;  %v4724_v15 = vld [vmem:[%s7474_s1 + $0x294] sm:$0xf0]  ;;  %v3563_v16 = vld [vmem:[%s7474_s1 + $0x388] sm:$0xf]  ;;  %v3836_v17 = vor.u32 %v4824_v10, %v3835_v9 }
  0x7e   :  { %1598 = vmatpush.bf16.msrb.mxu2 %v3132_v28  ;;  %v4756_v21 = vld [vmem:[%s7474_s1 + $0x394] sm:$0xf0]  ;;  %v3691_v23 = vld [vmem:[%s7474_s1 + $0x488] sm:$0xf]  ;;  %v3436_v27 = vor.u32 %v4724_v15, %v3435_v14 }
  0x7f   :  { %1611 = vmatpush.bf16.msrb.mxu3 %v3260_v32  ;;  %v4788_v24 = vld [vmem:[%s7474_s1 + $0x494] sm:$0xf0]  ;;  %v3819_v25 = vld [vmem:[%s7474_s1 + $0x588] sm:$0xf]  ;;  %v3564_v28 = vor.u32 %v4756_v21, %v3563_v16  ;;  %v4670_v16 = vld [vmem:[%s7474_s1 + $0xec] sm:$0xf] }
  0x80   :  { %1573 = vmatpush.bf16.msrb.mxu0 %v3752_v42  ;;  %v4820_v26 = vld [vmem:[%s7474_s1 + $0x594] sm:$0xf0]  ;;  %v3692_v29 = vor.u32 %v4788_v24, %v3691_v23  ;;  %v3419_v30 = vld [vmem:[%s7474_s1 + $0x268] sm:$0xf]  ;;  %v3229_v21 = vld [vmem:[%s7474_s1 + $0xf8] sm:$0xf0] }
  0x81   :  { %1586 = vmatpush.bf16.msrb.mxu1 %v3880_v46  ;;  %v4720_v31 = vld [vmem:[%s7474_s1 + $0x274] sm:$0xf0]  ;;  %v3547_v32 = vld [vmem:[%s7474_s1 + $0x368] sm:$0xf]  ;;  %v3820_v33 = vor.u32 %v4820_v26, %v3819_v25  ;;  %v4702_v23 = vld [vmem:[%s7474_s1 + $0x1ec] sm:$0xf] }
  0x82   :  { %1599 = vmatpush.bf16.msrb.mxu2 %v3116_v47  ;;  %v4752_v34 = vld [vmem:[%s7474_s1 + $0x374] sm:$0xf0]  ;;  %v3675_v35 = vld [vmem:[%s7474_s1 + $0x468] sm:$0xf]  ;;  %v3420_v42 = vor.u32 %v4720_v31, %v3419_v30  ;;  %v3357_v24 = vld [vmem:[%s7474_s1 + $0x1f8] sm:$0xf0]  ;;  %v3232_v31 = vor.u32 %v4670_v16, %v3229_v21 }
  0x83   :  { %1612 = vmatpush.bf16.msrb.mxu3 %v3244_v50  ;;  %1574 = vmatmul.bf16.vlgmr.msrb.gmra.mxu0 %v5555_v41  ;;  %v4784_v36 = vld [vmem:[%s7474_s1 + $0x474] sm:$0xf0]  ;;  %v3803_v38 = vld [vmem:[%s7474_s1 + $0x568] sm:$0xf]  ;;  %v3548_v43 = vor.u32 %v4752_v34, %v3547_v32  ;;  %v3360_v32 = vor.u32 %v4702_v23, %v3357_v24  ;;  %v3421_v16 = vld [vmem:[%s7474_s1 + $0x278] sm:$0xf0] }
  0x84   :  { %1618 = vmatpush.bf16.msra.mxu0 %v3484_v51  ;;  %1587 = vmatmul.bf16.vlgmr.msrb.gmra.mxu1 %v5545_v37  ;;  %v4816_v39 = vld [vmem:[%s7474_s1 + $0x574] sm:$0xf0]  ;;  %v3676_v44 = vor.u32 %v4784_v36, %v3675_v35  ;;  %v3403_v45 = vld [vmem:[%s7474_s1 + $0x248] sm:$0xf]  ;;  %v4666_v35 = vld [vmem:[%s7474_s1 + $0xcc] sm:$0xf] }
  0x85   :  { %1631 = vmatpush.bf16.msra.mxu1 %v3612_v52  ;;  %1600 = vmatmul.bf16.vlgmr.msrb.gmra.mxu2 %v5391_v19  ;;  %v4716_v46 = vld [vmem:[%s7474_s1 + $0x254] sm:$0xf0]  ;;  %v3531_v47 = vld [vmem:[%s7474_s1 + $0x348] sm:$0xf]  ;;  %v3804_v48 = vor.u32 %v4816_v39, %v3803_v38  ;;  %v3213_v38 = vld [vmem:[%s7474_s1 + $0xd8] sm:$0xf0] }
  0x86   :  { %1644 = vmatpush.bf16.msra.mxu2 %v3740_v53  ;;  %1613 = vmatmul.bf16.vlgmr.msrb.gmra.mxu3 %v5395_v22  ;;  %v4748_v49 = vld [vmem:[%s7474_s1 + $0x354] sm:$0xf0]  ;;  %v3659_v50 = vld [vmem:[%s7474_s1 + $0x448] sm:$0xf]  ;;  %v3404_v54 = vor.u32 %v4716_v46, %v3403_v45  ;;  %v4698_v39 = vld [vmem:[%s7474_s1 + $0x1cc] sm:$0xf]  ;;  %v3216_v46 = vor.u32 %v4666_v35, %v3213_v38 }
  0x87   :  { %1657 = vmatpush.bf16.msra.mxu3 %v3868_v57  ;;  %v4780_v51 = vld [vmem:[%s7474_s1 + $0x454] sm:$0xf0]  ;;  %v3787_v52 = vld [vmem:[%s7474_s1 + $0x548] sm:$0xf]  ;;  %v3532_v55 = vor.u32 %v4748_v49, %v3531_v47 }
  0x88   :  { %1619 = vmatpush.bf16.msra.mxu0 %v3468_v63  ;;  %v4812_v53 = vld [vmem:[%s7474_s1 + $0x554] sm:$0xf0]  ;;  %v3660_v56 = vor.u32 %v4780_v51, %v3659_v50  ;;  %v3387_v57 = vld [vmem:[%s7474_s1 + $0x228] sm:$0xf]  ;;  %v4662_v50 = vld [vmem:[%s7474_s1 + $0xac] sm:$0xf] }
  0x89   :  { %1632 = vmatpush.bf16.msra.mxu1 %v3596_v0  ;;  %v4712_v58 = vld [vmem:[%s7474_s1 + $0x234] sm:$0xf0]  ;;  %v3515_v59 = vld [vmem:[%s7474_s1 + $0x328] sm:$0xf]  ;;  %v3788_v60 = vor.u32 %v4812_v53, %v3787_v52  ;;  %v3197_v52 = vld [vmem:[%s7474_s1 + $0xb8] sm:$0xf0] }
  0x8a   :  { %1645 = vmatpush.bf16.msra.mxu2 %v3724_v1  ;;  %v4744_v61 = vld [vmem:[%s7474_s1 + $0x334] sm:$0xf0]  ;;  %v3643_v62 = vld [vmem:[%s7474_s1 + $0x428] sm:$0xf]  ;;  %v3388_v2 = vor.u32 %v4712_v58, %v3387_v57  ;;  %v4694_v53 = vld [vmem:[%s7474_s1 + $0x1ac] sm:$0xf]  ;;  %v3200_v58 = vor.u32 %v4662_v50, %v3197_v52 }
  0x8b   :  { %1658 = vmatpush.bf16.msra.mxu3 %v3852_v5  ;;  %v4776_v63 = vld [vmem:[%s7474_s1 + $0x434] sm:$0xf0]  ;;  %v3771_v0 = vld [vmem:[%s7474_s1 + $0x528] sm:$0xf]  ;;  %v3516_v5 = vor.u32 %v4744_v61, %v3515_v59 }
  0x8c   :  { %1620 = vmatpush.bf16.msra.mxu0 %v3452_v11  ;;  %v4808_v1 = vld [vmem:[%s7474_s1 + $0x534] sm:$0xf0]  ;;  %v3371_v3 = vld [vmem:[%s7474_s1 + $0x208] sm:$0xf]  ;;  %v3644_v6 = vor.u32 %v4776_v63, %v3643_v62  ;;  %v4658_v62 = vld [vmem:[%s7474_s1 + $0x8c] sm:$0xf] }
  0x8d   :  { %1633 = vmatpush.bf16.msra.mxu1 %v3580_v12  ;;  %v4708_v4 = vld [vmem:[%s7474_s1 + $0x214] sm:$0xf0]  ;;  %v3499_v7 = vld [vmem:[%s7474_s1 + $0x308] sm:$0xf]  ;;  %v3772_v10 = vor.u32 %v4808_v1, %v3771_v0  ;;  %v3181_v0 = vld [vmem:[%s7474_s1 + $0x98] sm:$0xf0] }
  0x8e   :  { %1646 = vmatpush.bf16.msra.mxu2 %v3708_v13  ;;  %v4740_v8 = vld [vmem:[%s7474_s1 + $0x314] sm:$0xf0]  ;;  %v3627_v9 = vld [vmem:[%s7474_s1 + $0x408] sm:$0xf]  ;;  %v4690_v1 = vld [vmem:[%s7474_s1 + $0x18c] sm:$0xf] }
  0x8f   :  { %1659 = vmatpush.bf16.msra.mxu3 %v3836_v17  ;;  %v4772_v11 = vld [vmem:[%s7474_s1 + $0x414] sm:$0xf0]  ;;  %v3755_v12 = vld [vmem:[%s7474_s1 + $0x508] sm:$0xf]  ;;  %v3372_v17 = vor.u32 %v4708_v4, %v3371_v3  ;;  %v3500_v25 = vor.u32 %v4740_v8, %v3499_v7  ;;  %v4722_v3 = vld [vmem:[%s7474_s1 + $0x28c] sm:$0xf] }
  0x90   :  { %1621 = vmatpush.bf16.msra.mxu0 %v3436_v27  ;;  %v4804_v13 = vld [vmem:[%s7474_s1 + $0x514] sm:$0xf0]  ;;  %v3995_v14 = vld [vmem:[%s7474_s1 + $0x6e8] sm:$0xf]  ;;  %v3628_v26 = vor.u32 %v4772_v11, %v3627_v9  ;;  %v4734_v27 = vld [vmem:[%s7474_s1 + $0x2ec] sm:$0xf] }
  0x91   :  { %1634 = vmatpush.bf16.msra.mxu1 %v3564_v28  ;;  %v4864_v15 = vld [vmem:[%s7474_s1 + $0x6f4] sm:$0xf0]  ;;  %v3485_v28 = vld [vmem:[%s7474_s1 + $0x2f8] sm:$0xf0]  ;;  %v3931_v8 = vld [vmem:[%s7474_s1 + $0x668] sm:$0xf] }
  0x92   :  { %1647 = vmatpush.bf16.msra.mxu2 %v3692_v29  ;;  %v3756_v29 = vor.u32 %v4804_v13, %v3755_v12  ;;  %v3996_v30 = vor.u32 %v4864_v15, %v3995_v14  ;;  %v4860_v34 = vld [vmem:[%s7474_s1 + $0x6d4] sm:$0xf0]  ;;  %v3488_v36 = vor.u32 %v4734_v27, %v3485_v28  ;;  %v3437_v4 = vld [vmem:[%s7474_s1 + $0x298] sm:$0xf0]  ;;  %v4686_v13 = vld [vmem:[%s7474_s1 + $0x16c] sm:$0xf] }
  0x93   :  { %1660 = vmatpush.bf16.msra.mxu3 %v3820_v33  ;;  %v3979_v33 = vld [vmem:[%s7474_s1 + $0x6c8] sm:$0xf]  ;;  %v4856_v49 = vld [vmem:[%s7474_s1 + $0x6b4] sm:$0xf0]  ;;  %v3440_v11 = vor.u32 %v4722_v3, %v3437_v4  ;;  %v3165_v12 = vld [vmem:[%s7474_s1 + $0x78] sm:$0xf0] }
  0x94   :  { %1622 = vmatpush.bf16.msra.mxu0 %v3420_v42  ;;  %v3341_v42 = vld [vmem:[%s7474_s1 + $0x1d8] sm:$0xf0]  ;;  %v3980_v45 = vor.u32 %v4860_v34, %v3979_v33  ;;  %v4852_v61 = vld [vmem:[%s7474_s1 + $0x694] sm:$0xf0]  ;;  %v4718_v15 = vld [vmem:[%s7474_s1 + $0x26c] sm:$0xf] }
  0x95   :  { %1635 = vmatpush.bf16.msra.mxu1 %v3548_v43  ;;  %v4730_v43 = vld [vmem:[%s7474_s1 + $0x2cc] sm:$0xf]  ;;  %v3344_v47 = vor.u32 %v4698_v39, %v3341_v42  ;;  %v4848_v9 = vld [vmem:[%s7474_s1 + $0x674] sm:$0xf0]  ;;  %v3293_v14 = vld [vmem:[%s7474_s1 + $0x178] sm:$0xf0]  ;;  %v3424_v27 = vor.u32 %v4718_v15, %v3421_v16 }
  0x96   :  { %1648 = vmatpush.bf16.msra.mxu2 %v3676_v44  ;;  %v3469_v44 = vld [vmem:[%s7474_s1 + $0x2d8] sm:$0xf0]  ;;  %v3296_v23 = vor.u32 %v4686_v13, %v3293_v14  ;;  %v3915_v24 = vld [vmem:[%s7474_s1 + $0x648] sm:$0xf]  ;;  %v4840_v39 = vld [vmem:[%s7474_s1 + $0x634] sm:$0xf0] }
  0x97   :  { %1661 = vmatpush.bf16.msra.mxu3 %v3804_v48  ;;  %v3963_v48 = vld [vmem:[%s7474_s1 + $0x6a8] sm:$0xf]  ;;  %v3472_v51 = vor.u32 %v4730_v43, %v3469_v44  ;;  %v3149_v28 = vld [vmem:[%s7474_s1 + $0x58] sm:$0xf0]  ;;  %v4646_v42 = vld [vmem:[%s7474_s1 + $0x2c] sm:$0xf] }
  0x98   :  { %1623 = vmatpush.bf16.msra.mxu0 %v3404_v54  ;;  %v3325_v54 = vld [vmem:[%s7474_s1 + $0x1b8] sm:$0xf0]  ;;  %v3964_v57 = vor.u32 %v4856_v49, %v3963_v48  ;;  %v3899_v38 = vld [vmem:[%s7474_s1 + $0x628] sm:$0xf]  ;;  %v4710_v48 = vld [vmem:[%s7474_s1 + $0x22c] sm:$0xf] }
  0x99   :  { %1636 = vmatpush.bf16.msra.mxu1 %v3532_v55  ;;  %v4726_v55 = vld [vmem:[%s7474_s1 + $0x2ac] sm:$0xf]  ;;  %v3328_v59 = vor.u32 %v4694_v53, %v3325_v54  ;;  %v3389_v49 = vld [vmem:[%s7474_s1 + $0x238] sm:$0xf0]  ;;  %v3900_v50 = vor.u32 %v4840_v39, %v3899_v38  ;;  %v4836_v52 = vld [vmem:[%s7474_s1 + $0x614] sm:$0xf0] }
  0x9a   :  { %1649 = vmatpush.bf16.msra.mxu2 %v3660_v56  ;;  %v3453_v56 = vld [vmem:[%s7474_s1 + $0x2b8] sm:$0xf0]  ;;  %v4790_v39 = vld [vmem:[%s7474_s1 + $0x4ac] sm:$0xf] }
  0x9b   :  { %1662 = vmatpush.bf16.msra.mxu3 %v3788_v60  ;;  %v3947_v60 = vld [vmem:[%s7474_s1 + $0x688] sm:$0xf]  ;;  %v3456_v63 = vor.u32 %v4726_v55, %v3453_v56  ;;  %v4642_v55 = vld [vmem:[%s7474_s1 + $0xc] sm:$0xf]  ;;  %v3117_v56 = vld [vmem:[%s7474_s1 + $0x18] sm:$0xf0] }
  0x9c   :  { %1624 = vmatpush.bf16.msra.mxu0 %v3388_v2  ;;  %v3309_v2 = vld [vmem:[%s7474_s1 + $0x198] sm:$0xf0] }
  0x9d   :  { %1637 = vmatpush.bf16.msra.mxu1 %v3516_v5  ;;  %v3948_v5 = vor.u32 %v4852_v61, %v3947_v60  ;;  %v3312_v7 = vor.u32 %v4690_v1, %v3309_v2  ;;  %v3245_v60 = vld [vmem:[%s7474_s1 + $0x118] sm:$0xf0]  ;;  %v4706_v61 = vld [vmem:[%s7474_s1 + $0x20c] sm:$0xf] }
  0x9e   :  { %1650 = vmatpush.bf16.msra.mxu2 %v3644_v6  ;;  %v3184_v6 = vor.u32 %v4658_v62, %v3181_v0  ;;  %v3373_v62 = vld [vmem:[%s7474_s1 + $0x218] sm:$0xf0]  ;;  %v4766_v0 = vld [vmem:[%s7474_s1 + $0x3ec] sm:$0xf] }
  0x9f   :  { %1663 = vmatpush.bf16.msra.mxu3 %v3772_v10  ;;  %v4654_v10 = vld [vmem:[%s7474_s1 + $0x6c] sm:$0xf]  ;;  %v3613_v1 = vld [vmem:[%s7474_s1 + $0x3f8] sm:$0xf0]  ;;  %v3376_v13 = vor.u32 %v4706_v61, %v3373_v62 }
  0xa0   :  { %1625 = vmatpush.bf16.msra.mxu0 %v3372_v17  ;;  %v3932_v17 = vor.u32 %v4848_v9, %v3931_v8  ;;  %v3168_v21 = vor.u32 %v4654_v10, %v3165_v12  ;;  %v4798_v2 = vld [vmem:[%s7474_s1 + $0x4ec] sm:$0xf]  ;;  %v3741_v4 = vld [vmem:[%s7474_s1 + $0x4f8] sm:$0xf0]  ;;  %v3120_v8 = vor.u32 %v4642_v55, %v3117_v56  ;;  %v3616_v14 = vor.u32 %v4766_v0, %v3613_v1 }
  0xa1   :  { %1638 = vmatpush.bf16.msra.mxu1 %v3500_v25  ;;  %v4844_v25 = vld [vmem:[%s7474_s1 + $0x654] sm:$0xf0]  ;;  %v4862_v10 = vld [vmem:[%s7474_s1 + $0x6ec] sm:$0xf]  ;;  %v3744_v15 = vor.u32 %v4798_v2, %v3741_v4  ;;  %v3581_v38 = vld [vmem:[%s7474_s1 + $0x3b8] sm:$0xf0] }
  0xa2   :  { %1651 = vmatpush.bf16.msra.mxu2 %v3628_v26  ;;  %v4650_v26 = vld [vmem:[%s7474_s1 + $0x4c] sm:$0xf]  ;;  %v3916_v33 = vor.u32 %v4844_v25, %v3915_v24  ;;  %v3725_v25 = vld [vmem:[%s7474_s1 + $0x4d8] sm:$0xf0] }
  0xa3   :  { %1664 = vmatpush.bf16.msra.mxu3 %v3756_v29  ;;  %1626 = vmatmul.bf16.vlgmr.msra.gmra.mxu0 %v5389_v18  ;;  %v4682_v29 = vld [vmem:[%s7474_s1 + $0x14c] sm:$0xf]  ;;  %v3152_v35 = vor.u32 %v4650_v26, %v3149_v28  ;;  %v3821_v55 = vld [vmem:[%s7474_s1 + $0x598] sm:$0xf0] }
  0xa4   :  { %1670 = vmatpush.bf16.msrb.mxu0 %v3996_v30  ;;  %1639 = vmatmul.bf16.vlgmr.msra.gmra.mxu1 %v5393_v20  ;;  %v3277_v30 = vld [vmem:[%s7474_s1 + $0x158] sm:$0xf0]  ;;  %v4826_v26 = vld [vmem:[%s7474_s1 + $0x5cc] sm:$0xf] }
  0xa5   :  { %1683 = vmatpush.bf16.msrb.mxu1 %v3232_v31  ;;  %1652 = vmatmul.bf16.vlgmr.msra.gmra.mxu2 %v5553_v40  ;;  %v4714_v31 = vld [vmem:[%s7474_s1 + $0x24c] sm:$0xf]  ;;  %v3549_v2 = vld [vmem:[%s7474_s1 + $0x378] sm:$0xf0] }
  0xa6   :  { %1696 = vmatpush.bf16.msrb.mxu2 %v3360_v32  ;;  %1665 = vmatmul.bf16.vlgmr.msra.gmra.mxu3 %v5555_v41  ;;  %v3405_v32 = vld [vmem:[%s7474_s1 + $0x258] sm:$0xf0]  ;;  %v4858_v28 = vld [vmem:[%s7474_s1 + $0x6cc] sm:$0xf] }
  0xa7   :  { %1709 = vmatpush.bf16.msrb.mxu3 %v3488_v36  ;;  %v3280_v36 = vor.u32 %v4682_v29, %v3277_v30  ;;  %v3408_v44 = vor.u32 %v4714_v31, %v3405_v32  ;;  %v3981_v29 = vld [vmem:[%s7474_s1 + $0x6d8] sm:$0xf0]  ;;  %v4850_v56 = vld [vmem:[%s7474_s1 + $0x68c] sm:$0xf] }
  0xa8   :  { %1671 = vmatpush.bf16.msrb.mxu0 %v3980_v45  ;;  %v3133_v45 = vld [vmem:[%s7474_s1 + $0x38] sm:$0xf0]  ;;  %v4750_v1 = vld [vmem:[%s7474_s1 + $0x36c] sm:$0xf] }
  0xa9   :  { %1684 = vmatpush.bf16.msrb.mxu1 %v3216_v46  ;;  %v4678_v46 = vld [vmem:[%s7474_s1 + $0x12c] sm:$0xf]  ;;  %v3136_v53 = vor.u32 %v4646_v42, %v3133_v45  ;;  %v3984_v42 = vor.u32 %v4858_v28, %v3981_v29  ;;  %v6460_v28 = vld [vmem:[%s7475_s2] sm:$0xf] }
  0xaa   :  { %1697 = vmatpush.bf16.msrb.mxu2 %v3344_v47  ;;  %v3261_v47 = vld [vmem:[%s7474_s1 + $0x138] sm:$0xf0]  ;;  %v4822_v45 = vld [vmem:[%s7474_s1 + $0x5ac] sm:$0xf] }
  0xab   :  { %1710 = vmatpush.bf16.msrb.mxu3 %v3472_v51  ;;  %v3883_v51 = vld [vmem:[%s7474_s1 + $0x608] sm:$0xf]  ;;  %v3264_v54 = vor.u32 %v4678_v46, %v3261_v47  ;;  %v3837_v46 = vld [vmem:[%s7474_s1 + $0x5b8] sm:$0xf0]  ;;  %v4854_v47 = vld [vmem:[%s7474_s1 + $0x6ac] sm:$0xf] }
  0xac   :  { %1672 = vmatpush.bf16.msrb.mxu0 %v3964_v57  ;;  %v6245_v34 = vpop.f32.mrf.mxu0  ;;  %v4674_v57 = vld [vmem:[%s7474_s1 + $0x10c] sm:$0xf]  ;;  %v3884_v3 = vor.u32 %v4836_v52, %v3883_v51  ;;  %v3840_v51 = vor.u32 %v4822_v45, %v3837_v46  ;;  %v3565_v52 = vld [vmem:[%s7474_s1 + $0x398] sm:$0xf0] }
  0xad   :  { %1685 = vmatpush.bf16.msrb.mxu1 %v3200_v58  ;;  %v6256_v43 = vpop.f32.mrf.mxu1  ;;  %v6288_v58 = vpop.f32.mrf.mxu2  ;;  %v3248_v9 = vor.u32 %v4674_v57, %v3245_v60  ;;  %v3949_v57 = vld [vmem:[%s7474_s1 + $0x698] sm:$0xf0]  ;;  %v4838_v46 = vld [vmem:[%s7474_s1 + $0x62c] sm:$0xf] }
  0xae   :  { %1698 = vmatpush.bf16.msrb.mxu2 %v3328_v59  ;;  %v3392_v59 = vor.u32 %v4710_v48, %v3389_v49  ;;  %v3965_v48 = vld [vmem:[%s7474_s1 + $0x6b8] sm:$0xf0]  ;;  %v3952_v4 = vor.u32 %v4850_v56, %v3949_v57  ;;  %v4834_v57 = vld [vmem:[%s7474_s1 + $0x60c] sm:$0xf] }
  0xaf   :  { %1711 = vmatpush.bf16.msrb.mxu3 %v3456_v63  ;;  %v6299_v63 = vpop.f32.mrf.mxu3  ;;  %v3773_v45 = vld [vmem:[%s7474_s1 + $0x538] sm:$0xf0] }
  0xb0   :  { %1673 = vmatpush.bf16.msrb.mxu0 %v3948_v5  ;;  %v4830_v5 = vld [vmem:[%s7474_s1 + $0x5ec] sm:$0xf]  ;;  %v3757_v56 = vld [vmem:[%s7474_s1 + $0x518] sm:$0xf0] }
  0xb1   :  { %1686 = vmatpush.bf16.msrb.mxu1 %v3184_v6  ;;  %v3869_v6 = vld [vmem:[%s7474_s1 + $0x5f8] sm:$0xf0] }
  0xb2   :  { %1699 = vmatpush.bf16.msrb.mxu2 %v3312_v7  ;;  %v3872_v16 = vor.u32 %v4830_v5, %v3869_v6  ;;  %v3677_v5 = vld [vmem:[%s7474_s1 + $0x478] sm:$0xf0]  ;;  %v4814_v6 = vld [vmem:[%s7474_s1 + $0x56c] sm:$0xf] }
  0xb3   :  { %1712 = vmatpush.bf16.msrb.mxu3 %v3440_v11  ;;  %v3997_v11 = vld [vmem:[%s7474_s1 + $0x6f8] sm:$0xf0] }
  0xb4   :  { %1674 = vmatpush.bf16.msrb.mxu0 %v3932_v17  ;;  %v1421_v7 = vpop.f32.mrf.mxu0  ;;  %v4762_v17 = vld [vmem:[%s7474_s1 + $0x3cc] sm:$0xf]  ;;  %v4000_v24 = vor.u32 %v4862_v10, %v3997_v11  ;;  %v3552_v10 = vor.u32 %v4750_v1, %v3549_v2 }
  0xb5   :  { %1687 = vmatpush.bf16.msrb.mxu1 %v3168_v21  ;;  %v1434_v12 = vpop.f32.mrf.mxu1  ;;  %v3597_v21 = vld [vmem:[%s7474_s1 + $0x3d8] sm:$0xf0]  ;;  %v1447_v30 = vpop.f32.mrf.mxu2 }
  0xb6   :  { %1700 = vmatpush.bf16.msrb.mxu2 %v3296_v23  ;;  %v4794_v23 = vld [vmem:[%s7474_s1 + $0x4cc] sm:$0xf]  ;;  %v3600_v31 = vor.u32 %v4762_v17, %v3597_v21  ;;  %v3805_v7 = vld [vmem:[%s7474_s1 + $0x578] sm:$0xf0] }
  0xb7   :  { %1713 = vmatpush.bf16.msrb.mxu3 %v3424_v27  ;;  %v3853_v27 = vld [vmem:[%s7474_s1 + $0x5d8] sm:$0xf0]  ;;  %v1460_v32 = vpop.f32.mrf.mxu3  ;;  %v3808_v12 = vor.u32 %v4814_v6, %v3805_v7 }
  0xb8   :  { %1675 = vmatpush.bf16.msrb.mxu0 %v3916_v33  ;;  %v3728_v33 = vor.u32 %v4794_v23, %v3725_v25  ;;  %v3661_v21 = vld [vmem:[%s7474_s1 + $0x458] sm:$0xf0]  ;;  %v4810_v23 = vld [vmem:[%s7474_s1 + $0x54c] sm:$0xf] }
  0xb9   :  { %1688 = vmatpush.bf16.msrb.mxu1 %v3152_v35  ;;  %v3856_v35 = vor.u32 %v4826_v26, %v3853_v27  ;;  %v4842_v25 = vld [vmem:[%s7474_s1 + $0x64c] sm:$0xf]  ;;  %v3917_v26 = vld [vmem:[%s7474_s1 + $0x658] sm:$0xf0] }
  0xba   :  { %1701 = vmatpush.bf16.msrb.mxu2 %v3280_v36  ;;  %v4758_v36 = vld [vmem:[%s7474_s1 + $0x3ac] sm:$0xf] }
  0xbb   :  { %1714 = vmatpush.bf16.msrb.mxu3 %v3408_v44  ;;  %v3709_v44 = vld [vmem:[%s7474_s1 + $0x4b8] sm:$0xf0]  ;;  %v3584_v49 = vor.u32 %v4758_v36, %v3581_v38  ;;  %v4774_v38 = vld [vmem:[%s7474_s1 + $0x42c] sm:$0xf] }
  0xbc   :  { %1676 = vmatpush.bf16.msrb.mxu0 %v3900_v50  ;;  %v3712_v50 = vor.u32 %v4790_v39, %v3709_v44  ;;  %v3517_v36 = vld [vmem:[%s7474_s1 + $0x338] sm:$0xf0]  ;;  %v3920_v39 = vor.u32 %v4842_v25, %v3917_v26  ;;  %v4806_v44 = vld [vmem:[%s7474_s1 + $0x52c] sm:$0xf] }
  0xbd   :  { %1689 = vmatpush.bf16.msrb.mxu1 %v3136_v53  ;;  %v3968_v53 = vor.u32 %v4854_v47, %v3965_v48  ;;  %v3901_v47 = vld [vmem:[%s7474_s1 + $0x638] sm:$0xf0]  ;;  %v257_v48 = vperm.slane %v6460_v28, 0 }
  0xbe   :  { %1702 = vmatpush.bf16.msrb.mxu2 %v3264_v54  ;;  %v4818_v54 = vld [vmem:[%s7474_s1 + $0x58c] sm:$0xf] }
  0xbf   :  { %1715 = vmatpush.bf16.msrb.mxu3 %v3392_v59  ;;  %v3824_v0 = vor.u32 %v4818_v54, %v3821_v55  ;;  %v3904_v54 = vor.u32 %v4838_v46, %v3901_v47  ;;  %v4802_v55 = vld [vmem:[%s7474_s1 + $0x50c] sm:$0xf]  ;;  %v4875_v46 = vld [vmem:[%s7476_s3 + $0x4c] sm:$0xf0] }
  0xc0   :  { %1677 = vmatpush.bf16.msrb.mxu0 %v3884_v3  ;;  %v6401_v60 = vpop.f32.mrf.mxu0  ;;  %v4782_v3 = vld [vmem:[%s7474_s1 + $0x46c] sm:$0xf]  ;;  %v3760_v6 = vor.u32 %v4802_v55, %v3757_v56  ;;  %v4871_v56 = vld [vmem:[%s7476_s3 + $0x2c] sm:$0xf0] }
  0xc1   :  { %1690 = vmatpush.bf16.msrb.mxu1 %v3120_v8  ;;  %v6403_v61 = vpop.f32.mrf.mxu1  ;;  %v4846_v8 = vld [vmem:[%s7474_s1 + $0x66c] sm:$0xf]  ;;  %v3680_v11 = vor.u32 %v4782_v3, %v3677_v5  ;;  %v4243_v3 = vld [vmem:[%s7476_s3 + $0x1e0] sm:$0xf] }
  0xc2   :  { %1703 = vmatpush.bf16.msrb.mxu2 %v3248_v9  ;;  %v3933_v9 = vld [vmem:[%s7474_s1 + $0x678] sm:$0xf0] }
  0xc3   :  { %1716 = vmatpush.bf16.msrb.mxu3 %v3376_v13  ;;  %1678 = vmatmul.bf16.vlgmr.msrb.gmra.mxu0 %v5545_v37  ;;  %v4746_v13 = vld [vmem:[%s7474_s1 + $0x34c] sm:$0xf]  ;;  %v3936_v17 = vor.u32 %v4846_v8, %v3933_v9  ;;  %v1420_v9 = vadd.f32 %v6245_v34, %v257_v48  ;;  %v4371_v48 = vld [vmem:[%s7476_s3 + $0x2e0] sm:$0xf] }
  0xc4   :  { %1722 = vmatpush.bf16.msra.mxu0 %v3616_v14  ;;  %1691 = vmatmul.bf16.vlgmr.msrb.gmra.mxu1 %v5391_v19  ;;  %v3693_v19 = vld [vmem:[%s7474_s1 + $0x498] sm:$0xf0] }
  0xc5   :  { %1735 = vmatpush.bf16.msra.mxu1 %v3744_v15  ;;  %1704 = vmatmul.bf16.vlgmr.msrb.gmra.mxu2 %v5395_v22  ;;  %v4754_v22 = vld [vmem:[%s7474_s1 + $0x38c] sm:$0xf]  ;;  %v3533_v14 = vld [vmem:[%s7474_s1 + $0x358] sm:$0xf0] }
  0xc6   :  { %1748 = vmatpush.bf16.msra.mxu2 %v3872_v16  ;;  %1717 = vmatmul.bf16.vlgmr.msrb.gmra.mxu3 %v5389_v18  ;;  %v4786_v18 = vld [vmem:[%s7474_s1 + $0x48c] sm:$0xf]  ;;  %v3568_v59 = vor.u32 %v4754_v22, %v3565_v52  ;;  %v3536_v29 = vor.u32 %v4746_v13, %v3533_v14  ;;  %v3776_v22 = vor.u32 %v4806_v44, %v3773_v45  ;;  %v3501_v52 = vld [vmem:[%s7474_s1 + $0x318] sm:$0xf0]  ;;  %v4227_v13 = vld [vmem:[%s7476_s3 + $0x1c0] sm:$0xf] }
  0xc7   :  { %1761 = vmatpush.bf16.msra.mxu3 %v4000_v24  ;;  %v3696_v62 = vor.u32 %v4786_v18, %v3693_v19  ;;  %v4778_v15 = vld [vmem:[%s7474_s1 + $0x44c] sm:$0xf]  ;;  %v3789_v24 = vld [vmem:[%s7474_s1 + $0x558] sm:$0xf0]  ;;  %v4923_v14 = vld [vmem:[%s7476_s3 + $0x1cc] sm:$0xf0] }
  0xc8   :  { %1723 = vmatpush.bf16.msra.mxu0 %v3600_v31  ;;  %v6438_v16 = vpop.f32.mrf.mxu2  ;;  %v1473_v30 = vpop.f32.mrf.mxu0  ;;  %v3664_v32 = vor.u32 %v4778_v15, %v3661_v21  ;;  %v4770_v18 = vld [vmem:[%s7474_s1 + $0x40c] sm:$0xf]  ;;  %v1433_v15 = vadd.f32 %v6256_v43, %v1420_v9  ;;  %v4083_v21 = vld [vmem:[%s7476_s3 + $0xa0] sm:$0xf] }
  0xc9   :  { %1736 = vmatpush.bf16.msra.mxu1 %v3728_v33  ;;  %v6455_v27 = vpop.f32.mrf.mxu3  ;;  %v1486_v31 = vpop.f32.mrf.mxu1  ;;  %v3792_v33 = vor.u32 %v4810_v23, %v3789_v24  ;;  %v4887_v23 = vld [vmem:[%s7476_s3 + $0xac] sm:$0xf0]  ;;  %v4211_v43 = vld [vmem:[%s7476_s3 + $0x1a0] sm:$0xf] }
  0xca   :  { %1749 = vmatpush.bf16.msra.mxu2 %v3856_v35  ;;  %v4742_v35 = vld [vmem:[%s7474_s1 + $0x32c] sm:$0xf]  ;;  %v4084_v24 = vor.u32 %v4887_v23, %v4083_v21  ;;  %v1446_v25 = vadd.f32 %v6288_v58, %v1433_v15  ;;  %v4339_v9 = vld [vmem:[%s7476_s3 + $0x2a0] sm:$0xf]  ;;  %v4245_v15 = vld [vmem:[%s7476_s3 + $0x1f0] sm:$0xf0] }
  0xcb   :  { %1762 = vmatpush.bf16.msra.mxu3 %v3984_v42  ;;  %v3645_v42 = vld [vmem:[%s7474_s1 + $0x438] sm:$0xf0] }
  0xcc   :  { %1724 = vmatpush.bf16.msra.mxu0 %v3584_v49  ;;  %v3520_v49 = vor.u32 %v4742_v35, %v3517_v36  ;;  %v1459_v31 = vadd.f32 %v6299_v63, %v1446_v25  ;;  %v4879_v35 = vld [vmem:[%s7476_s3 + $0x6c] sm:$0xf0] }
  0xcd   :  { %1737 = vmatpush.bf16.msra.mxu1 %v3712_v50  ;;  %v4738_v50 = vld [vmem:[%s7474_s1 + $0x30c] sm:$0xf]  ;;  %v4911_v63 = vld [vmem:[%s7476_s3 + $0x16c] sm:$0xf0] }
  0xce   :  { %1750 = vmatpush.bf16.msra.mxu2 %v3840_v51  ;;  %v3648_v51 = vor.u32 %v4774_v38, %v3645_v42  ;;  %v3504_v2 = vor.u32 %v4738_v50, %v3501_v52  ;;  %v4179_v38 = vld [vmem:[%s7476_s3 + $0x160] sm:$0xf]  ;;  %v1472_v44 = vadd.f32 %v6401_v60, %v1459_v31  ;;  %v4907_v50 = vld [vmem:[%s7476_s3 + $0x14c] sm:$0xf0]  ;;  %v258_v52 = vperm.slane %v6460_v28, 1 }
  0xcf   :  { %1763 = vmatpush.bf16.msra.mxu3 %v3968_v53  ;;  %v3629_v53 = vld [vmem:[%s7474_s1 + $0x418] sm:$0xf0]  ;;  %v4035_v42 = vld [vmem:[%s7476_s3 + $0x40] sm:$0xf]  ;;  %v4180_v45 = vor.u32 %v4911_v63, %v4179_v38  ;;  %v4947_v25 = vld [vmem:[%s7476_s3 + $0x28c] sm:$0xf0] }
  0xd0   :  { %1725 = vmatpush.bf16.msra.mxu0 %v3568_v59  ;;  %v1499_v19 = vpop.f32.mrf.mxu2  ;;  %v3885_v59 = vld [vmem:[%s7474_s1 + $0x618] sm:$0xf0]  ;;  %v3632_v5 = vor.u32 %v4770_v18, %v3629_v53  ;;  %v4163_v60 = vld [vmem:[%s7476_s3 + $0x140] sm:$0xf]  ;;  %v4036_v18 = vor.u32 %v4875_v46, %v4035_v42  ;;  %v4085_v63 = vld [vmem:[%s7476_s3 + $0xb0] sm:$0xf0] }
  0xd1   :  { %1738 = vmatpush.bf16.msra.mxu1 %v3696_v62  ;;  %v4115_v62 = vld [vmem:[%s7476_s3 + $0xe0] sm:$0xf]  ;;  %v1512_v1 = vpop.f32.mrf.mxu3  ;;  %v3888_v7 = vor.u32 %v4834_v57, %v3885_v59  ;;  %v4164_v55 = vor.u32 %v4907_v50, %v4163_v60  ;;  %v4917_v42 = vld [vmem:[%s7476_s3 + $0x1a4] sm:$0xf] }
  0xd2   :  { %1751 = vmatpush.bf16.msra.mxu2 %v3824_v0  ;;  %v4895_v0 = vld [vmem:[%s7476_s3 + $0xec] sm:$0xf0]  ;;  %v4019_v53 = vld [vmem:[%s7476_s3 + $0x20] sm:$0xf]  ;;  %v4881_v50 = vld [vmem:[%s7476_s3 + $0x84] sm:$0xf] }
  0xd3   :  { %1764 = vmatpush.bf16.msra.mxu3 %v3952_v4  ;;  %v4927_v4 = vld [vmem:[%s7476_s3 + $0x1ec] sm:$0xf0]  ;;  %v4116_v8 = vor.u32 %v4895_v0, %v4115_v62  ;;  %v4355_v59 = vld [vmem:[%s7476_s3 + $0x2c0] sm:$0xf] }
  0xd4   :  { %1726 = vmatpush.bf16.msra.mxu0 %v3552_v10  ;;  %v4244_v10 = vor.u32 %v4927_v4, %v4243_v3  ;;  %v4955_v62 = vld [vmem:[%s7476_s3 + $0x2cc] sm:$0xf0]  ;;  %v4147_v0 = vld [vmem:[%s7476_s3 + $0x120] sm:$0xf]  ;;  %v4020_v3 = vor.u32 %v4871_v56, %v4019_v53 }
  0xd5   :  { %1739 = vmatpush.bf16.msra.mxu1 %v3680_v11  ;;  %v4099_v11 = vld [vmem:[%s7476_s3 + $0xc0] sm:$0xf]  ;;  %v4356_v1 = vor.u32 %v4955_v62, %v4355_v59  ;;  %v4935_v56 = vld [vmem:[%s7476_s3 + $0x22c] sm:$0xf0] }
  0xd6   :  { %1752 = vmatpush.bf16.msra.mxu2 %v3808_v12  ;;  %v4891_v12 = vld [vmem:[%s7476_s3 + $0xcc] sm:$0xf0]  ;;  %v4003_v4 = vld [vmem:[%s7476_s3] sm:$0xf] }
  0xd7   :  { %1765 = vmatpush.bf16.msra.mxu3 %v3936_v17  ;;  %v4100_v34 = vor.u32 %v4891_v12, %v4099_v11  ;;  %v4228_v17 = vor.u32 %v4923_v14, %v4227_v13  ;;  %v4899_v11 = vld [vmem:[%s7476_s3 + $0x10c] sm:$0xf0]  ;;  %v4117_v12 = vld [vmem:[%s7476_s3 + $0xf0] sm:$0xf0] }
  0xd8   :  { %1727 = vmatpush.bf16.msra.mxu0 %v3536_v29  ;;  %v4195_v29 = vld [vmem:[%s7476_s3 + $0x180] sm:$0xf] }
  0xd9   :  { %1740 = vmatpush.bf16.msra.mxu1 %v3664_v32 }
  0xda   :  { %1753 = vmatpush.bf16.msra.mxu2 %v3792_v33  ;;  %v4051_v33 = vld [vmem:[%s7476_s3 + $0x60] sm:$0xf] }
  0xdb   :  { %1766 = vmatpush.bf16.msra.mxu3 %v3920_v39  ;;  %v4052_v39 = vor.u32 %v4879_v35, %v4051_v33  ;;  %v4307_v33 = vld [vmem:[%s7476_s3 + $0x260] sm:$0xf]  ;;  %v4943_v35 = vld [vmem:[%s7476_s3 + $0x26c] sm:$0xf0] }
  0xdc   :  { %1728 = vmatpush.bf16.msra.mxu0 %v3520_v49  ;;  %v4959_v49 = vld [vmem:[%s7476_s3 + $0x2ec] sm:$0xf0] }
  0xdd   :  { %1741 = vmatpush.bf16.msra.mxu1 %v3648_v51 }
  0xde   :  { %1754 = vmatpush.bf16.msra.mxu2 %v3776_v22  ;;  %v4372_v22 = vor.u32 %v4959_v49, %v4371_v48  ;;  %v4291_v48 = vld [vmem:[%s7476_s3 + $0x240] sm:$0xf]  ;;  %v4939_v49 = vld [vmem:[%s7476_s3 + $0x24c] sm:$0xf0] }
  0xdf   :  { %1767 = vmatpush.bf16.msra.mxu3 %v3904_v54  ;;  %v1485_v54 = vadd.f32 %v6403_v61, %v1472_v44  ;;  %v4903_v61 = vld [vmem:[%s7476_s3 + $0x12c] sm:$0xf0]  ;;  %v4213_v44 = vld [vmem:[%s7476_s3 + $0x1b0] sm:$0xf0] }
  0xe0   :  { %1729 = vmatpush.bf16.msra.mxu0 %v3504_v2  ;;  %v1523_v30 = vpop.f32.mrf.mxu0  ;;  %v1511_v2 = vadd.f32 %v6455_v27, %v258_v52  ;;  %v4216_v60 = vor.u32 %v4917_v42, %v4213_v44  ;;  %v4913_v52 = vld [vmem:[%s7476_s3 + $0x184] sm:$0xf]  ;;  %v4123_v42 = vld [vmem:[%s7476_s3 + $0xe8] sm:$0xf]  ;;  %v4896_v44 = vld [vmem:[%s7476_s3 + $0xf4] sm:$0xf0] }
  0xe1   :  { %1742 = vmatpush.bf16.msra.mxu1 %v3632_v5  ;;  %v6573_v36 = vpop.f32.mrf.mxu1  ;;  %v4867_v5 = vld [vmem:[%s7476_s3 + $0xc] sm:$0xf0] }
  0xe2   :  { %1755 = vmatpush.bf16.msra.mxu2 %v3760_v6  ;;  %v1498_v6 = vadd.f32 %v6438_v16, %v1485_v54  ;;  %v4893_v16 = vld [vmem:[%s7476_s3 + $0xe4] sm:$0xf]  ;;  %v4004_v21 = vor.u32 %v4867_v5, %v4003_v4 }
  0xe3   :  { %1768 = vmatpush.bf16.msra.mxu3 %v3888_v7  ;;  %1730 = vmatmul.bf16.vlgmr.msra.gmra.mxu0 %v5393_v20  ;;  %v4919_v20 = vld [vmem:[%s7476_s3 + $0x1ac] sm:$0xf0]  ;;  %v4148_v7 = vor.u32 %v4903_v61, %v4147_v0  ;;  %v4053_v0 = vld [vmem:[%s7476_s3 + $0x70] sm:$0xf0]  ;;  %v4873_v4 = vld [vmem:[%s7476_s3 + $0x44] sm:$0xf] }
  0xe4   :  { %2560 = vmatpush.bf16.msrb.mxu0 %v4116_v8  ;;  %1743 = vmatmul.bf16.vlgmr.msra.gmra.mxu1 %v5553_v40  ;;  %v4212_v26 = vor.u32 %v4919_v20, %v4211_v43  ;;  %v4067_v40 = vld [vmem:[%s7476_s3 + $0x80] sm:$0xf]  ;;  %v1774_v23 = vmax.f32 %v1498_v6, 0.0  ;;  %v4120_v20 = vor.u32 %v4893_v16, %v4117_v12  ;;  %v4037_v6 = vld [vmem:[%s7476_s3 + $0x50] sm:$0xf0] }
  0xe5   :  { %2573 = vmatpush.bf16.msrb.mxu1 %v4244_v10  ;;  %1756 = vmatmul.bf16.vlgmr.msra.gmra.mxu2 %v5555_v41  ;;  %v4883_v41 = vld [vmem:[%s7476_s3 + $0x8c] sm:$0xf0]  ;;  %v4131_v8 = vld [vmem:[%s7476_s3 + $0x100] sm:$0xf]  ;;  %v4373_v16 = vld [vmem:[%s7476_s3 + $0x2f0] sm:$0xf0] }
  0xe6   :  { %1769 = vmatmul.bf16.vlgmr.msra.gmra.mxu3 %v5545_v37  ;;  %v4915_v37 = vld [vmem:[%s7476_s3 + $0x18c] sm:$0xf0]  ;;  %v4068_v58 = vor.u32 %v4883_v41, %v4067_v40  ;;  %2586 = vmatpush.bf16.msrb.mxu2 %v4372_v22  ;;  %v4132_v43 = vor.u32 %v4899_v11, %v4131_v8  ;;  %v4889_v40 = vld [vmem:[%s7476_s3 + $0xc4] sm:$0xf]  ;;  %v4101_v41 = vld [vmem:[%s7476_s3 + $0xd0] sm:$0xf0]  ;;  %v6675_v31 = vpack.c.bf16 %v1774_v23, %v1774_v23 }
  0xe7   :  { %v4196_v32 = vor.u32 %v4915_v37, %v4195_v29  ;;  %v4951_v10 = vld [vmem:[%s7476_s3 + $0x2ac] sm:$0xf0]  ;;  %v4921_v37 = vld [vmem:[%s7476_s3 + $0x1c4] sm:$0xf]  ;;  %v4292_v22 = vor.u32 %v4939_v49, %v4291_v48  ;;  %v4251_v48 = vld [vmem:[%s7476_s3 + $0x1e8] sm:$0xf] }
  0xe8   :  { %2561 = vmatpush.bf16.msrb.mxu0 %v4100_v34  ;;  %v6588_v47 = vpop.f32.mrf.mxu2  ;;  %v1525_v19 = vpop.f32.mrf.mxu0  ;;  %v4340_v14 = vor.u32 %v4951_v10, %v4339_v9  ;;  %v4925_v34 = vld [vmem:[%s7476_s3 + $0x1e4] sm:$0xf]  ;;  %v4931_v8 = vld [vmem:[%s7476_s3 + $0x20c] sm:$0xf0]  ;;  %v4928_v49 = vld [vmem:[%s7476_s3 + $0x1f4] sm:$0xf0] }
  0xe9   :  { %2574 = vmatpush.bf16.msrb.mxu1 %v4228_v17  ;;  %v6602_v51 = vpop.f32.mrf.mxu3  ;;  %v1538_v57 = vpop.f32.mrf.mxu1  ;;  %v1524_v17 = vadd.f32 %v1523_v30, %v1511_v2  ;;  %v4181_v2 = vld [vmem:[%s7476_s3 + $0x170] sm:$0xf0]  ;;  %v4957_v11 = vld [vmem:[%s7476_s3 + $0x2e4] sm:$0xf] }
  0xea   :  { %2587 = vmatpush.bf16.msrb.mxu2 %v4356_v1  ;;  %v4909_v1 = vld [vmem:[%s7476_s3 + $0x164] sm:$0xf] }
  0xeb   :  { %v1537_v30 = vadd.f32 %v6573_v36, %v1524_v17  ;;  %v4885_v36 = vld [vmem:[%s7476_s3 + $0xa4] sm:$0xf]  ;;  %v4184_v9 = vor.u32 %v4909_v1, %v4181_v2  ;;  %v4040_v17 = vor.u32 %v4873_v4, %v4037_v6  ;;  %v4091_v2 = vld [vmem:[%s7476_s3 + $0xa8] sm:$0xf]  ;;  %v4983_v4 = vld [vmem:[%s7476_s3 + $0x3ac] sm:$0xf0] }
  0xec   :  { %2562 = vmatpush.bf16.msrb.mxu0 %v4084_v24  ;;  %v4323_v24 = vld [vmem:[%s7476_s3 + $0x280] sm:$0xf]  ;;  %v4088_v46 = vor.u32 %v4885_v36, %v4085_v63  ;;  %v4905_v12 = vld [vmem:[%s7476_s3 + $0x144] sm:$0xf]  ;;  %v4991_v63 = vld [vmem:[%s7476_s3 + $0x3ec] sm:$0xf0] }
  0xed   :  { %2575 = vmatpush.bf16.msrb.mxu1 %v4212_v26  ;;  %v4248_v26 = vor.u32 %v4925_v34, %v4245_v15  ;;  %v4324_v29 = vor.u32 %v4947_v25, %v4323_v24  ;;  %v4021_v24 = vld [vmem:[%s7476_s3 + $0x30] sm:$0xf0]  ;;  %v4499_v36 = vld [vmem:[%s7476_s3 + $0x3e0] sm:$0xf]  ;;  %v4888_v6 = vld [vmem:[%s7476_s3 + $0xb4] sm:$0xf0] }
  0xee   :  { %2588 = vmatpush.bf16.msrb.mxu2 %v4340_v14  ;;  %v4376_v14 = vor.u32 %v4957_v11, %v4373_v16  ;;  %v4092_v16 = vor.u32 %v4888_v6, %v4091_v2  ;;  %v4904_v2 = vld [vmem:[%s7476_s3 + $0x134] sm:$0xf0] }
  0xf0   :  { %2563 = vmatpush.bf16.msrb.mxu0 %v4068_v58  ;;  %v1551_v27 = vpop.f32.mrf.mxu2  ;;  %v4229_v58 = vld [vmem:[%s7476_s3 + $0x1d0] sm:$0xf0] }
  0xf1   :  { %2576 = vmatpush.bf16.msrb.mxu1 %v4196_v32  ;;  %v1564_v13 = vpop.f32.mrf.mxu3  ;;  %v4104_v32 = vor.u32 %v4889_v40, %v4101_v41  ;;  %v4232_v38 = vor.u32 %v4921_v37, %v4229_v58  ;;  %v4357_v40 = vld [vmem:[%s7476_s3 + $0x2d0] sm:$0xf0]  ;;  %v4901_v41 = vld [vmem:[%s7476_s3 + $0x124] sm:$0xf] }
  0xf2   :  { %2589 = vmatpush.bf16.msrb.mxu2 %v4324_v29  ;;  %v4165_v13 = vld [vmem:[%s7476_s3 + $0x150] sm:$0xf0]  ;;  %v4865_v58 = vld [vmem:[%s7476_s3 + $0x4] sm:$0xf] }
  0xf3   :  { %v4149_v29 = vld [vmem:[%s7476_s3 + $0x130] sm:$0xf0] }
  0xf4   :  { %2564 = vmatpush.bf16.msrb.mxu0 %v4052_v39  ;;  %v4308_v39 = vor.u32 %v4943_v35, %v4307_v33  ;;  %v4897_v33 = vld [vmem:[%s7476_s3 + $0x104] sm:$0xf]  ;;  %v4133_v35 = vld [vmem:[%s7476_s3 + $0x110] sm:$0xf0] }
  0xf5   :  { %2577 = vmatpush.bf16.msrb.mxu1 %v4180_v45  ;;  %v1550_v45 = vadd.f32 %v6588_v47, %v1537_v30  ;;  %v4069_v47 = vld [vmem:[%s7476_s3 + $0x90] sm:$0xf0] }
  0xf6   :  { %2590 = vmatpush.bf16.msrb.mxu2 %v4308_v39  ;;  %v4072_v54 = vor.u32 %v4881_v50, %v4069_v47  ;;  %v4949_v39 = vld [vmem:[%s7476_s3 + $0x2a4] sm:$0xf] }
  0xf7   :  { %v1563_v53 = vadd.f32 %v6602_v51, %v1550_v45  ;;  %v4877_v51 = vld [vmem:[%s7476_s3 + $0x64] sm:$0xf]  ;;  %v4500_v45 = vor.u32 %v4991_v63, %v4499_v36  ;;  %v4187_v36 = vld [vmem:[%s7476_s3 + $0x168] sm:$0xf]  ;;  %v4912_v63 = vld [vmem:[%s7476_s3 + $0x174] sm:$0xf0] }
  0xf8   :  { %2565 = vmatpush.bf16.msrb.mxu0 %v4036_v18  ;;  %v4197_v18 = vld [vmem:[%s7476_s3 + $0x190] sm:$0xf0]  ;;  %v4056_v5 = vor.u32 %v4877_v51, %v4053_v0  ;;  %v4235_v51 = vld [vmem:[%s7476_s3 + $0x1c8] sm:$0xf]  ;;  %v4924_v0 = vld [vmem:[%s7476_s3 + $0x1d4] sm:$0xf0] }
  0xf9   :  { %2578 = vmatpush.bf16.msrb.mxu1 %v4164_v55  ;;  %v4275_v55 = vld [vmem:[%s7476_s3 + $0x220] sm:$0xf]  ;;  %v4200_v59 = vor.u32 %v4913_v52, %v4197_v18  ;;  %2599 = vmatpush.bf16.msrb.mxu3 %v4500_v45  ;;  %v4136_v52 = vor.u32 %v4897_v33, %v4133_v35  ;;  %v4124_v18 = vor.u32 %v4896_v44, %v4123_v42  ;;  %v4933_v35 = vld [vmem:[%s7476_s3 + $0x224] sm:$0xf] }
  0xfa   :  { %2591 = vmatpush.bf16.msrb.mxu2 %v4292_v22  ;;  %v4276_v61 = vor.u32 %v4935_v56, %v4275_v55  ;;  %v4252_v55 = vor.u32 %v4928_v49, %v4251_v48  ;;  %v4892_v56 = vld [vmem:[%s7476_s3 + $0xd4] sm:$0xf0]  ;;  %v4419_v48 = vld [vmem:[%s7476_s3 + $0x340] sm:$0xf]  ;;  %v4971_v49 = vld [vmem:[%s7476_s3 + $0x34c] sm:$0xf0] }
  0xfc   :  { %2566 = vmatpush.bf16.msrb.mxu0 %v4020_v3 }
  0xfd   :  { %2579 = vmatpush.bf16.msrb.mxu1 %v4148_v7  ;;  %v4259_v7 = vld [vmem:[%s7476_s3 + $0x200] sm:$0xf] }
  0xfe   :  { %2592 = vmatpush.bf16.msrb.mxu2 %v4276_v61  ;;  %v4260_v10 = vor.u32 %v4931_v8, %v4259_v7  ;;  %v4941_v8 = vld [vmem:[%s7476_s3 + $0x264] sm:$0xf] }
 0x100   :  { %2567 = vmatpush.bf16.msrb.mxu0 %v4004_v21  ;;  %v1575_v19 = vpop.f32.mrf.mxu0  ;;  %v4869_v21 = vld [vmem:[%s7476_s3 + $0x24] sm:$0xf] }
 0x101   :  { %2580 = vmatpush.bf16.msrb.mxu1 %v4132_v43  ;;  %v1576_v57 = vadd.f32 %v1575_v19, %v1563_v53  ;;  %v1588_v62 = vpop.f32.mrf.mxu1  ;;  %v4024_v30 = vor.u32 %v4869_v21, %v4021_v24  ;;  %v4107_v53 = vld [vmem:[%s7476_s3 + $0xc8] sm:$0xf]  ;;  %v4483_v19 = vld [vmem:[%s7476_s3 + $0x3c0] sm:$0xf]  ;;  %v4293_v24 = vld [vmem:[%s7476_s3 + $0x250] sm:$0xf0] }
 0x102   :  { %2593 = vmatpush.bf16.msrb.mxu2 %v4260_v10  ;;  %v4108_v1 = vor.u32 %v4892_v56, %v4107_v53  ;;  %v4920_v10 = vld [vmem:[%s7476_s3 + $0x1b4] sm:$0xf0]  ;;  %v4075_v21 = vld [vmem:[%s7476_s3 + $0x88] sm:$0xf] }
 0x103   :  { %2568 = vmatmul.bf16.vlgmr.msrb.gmra.mxu0 %v6675_v31  ;;  %v1589_v3 = vadd.f32 %v1588_v62, %v1576_v57  ;;  %v4325_v62 = vld [vmem:[%s7476_s3 + $0x290] sm:$0xf0]  ;;  %v4171_v53 = vld [vmem:[%s7476_s3 + $0x148] sm:$0xf] }
 0x104   :  { %2612 = vmatpush.bf16.msra.mxu0 %v4120_v20  ;;  %v4168_v20 = vor.u32 %v4905_v12, %v4165_v13  ;;  %v4451_v12 = vld [vmem:[%s7476_s3 + $0x380] sm:$0xf]  ;;  %v4979_v13 = vld [vmem:[%s7476_s3 + $0x38c] sm:$0xf0] }
 0x105   :  { %2625 = vmatpush.bf16.msra.mxu1 %v4248_v26  ;;  %v1775_v27 = vmax.f32 %v1589_v3, 0.0  ;;  %v4953_v26 = vld [vmem:[%s7476_s3 + $0x2c4] sm:$0xf]  ;;  %v4467_v3 = vld [vmem:[%s7476_s3 + $0x3a0] sm:$0xf] }
 0x106   :  { %2638 = vmatpush.bf16.msra.mxu2 %v4376_v14  ;;  %v4360_v37 = vor.u32 %v4953_v26, %v4357_v40  ;;  %v4468_v7 = vor.u32 %v4983_v4, %v4467_v3  ;;  %v4937_v14 = vld [vmem:[%s7476_s3 + $0x244] sm:$0xf]  ;;  %v4916_v26 = vld [vmem:[%s7476_s3 + $0x194] sm:$0xf0] }
 0x107   :  { %v6758_v34 = vpack.c.bf16 %v1775_v27, %v1775_v27  ;;  %v4309_v27 = vld [vmem:[%s7476_s3 + $0x270] sm:$0xf0]  ;;  %v4296_v40 = vor.u32 %v4937_v14, %v4293_v24  ;;  %v4900_v14 = vld [vmem:[%s7476_s3 + $0x114] sm:$0xf0] }
 0x108   :  { %2613 = vmatpush.bf16.msra.mxu0 %v4104_v32  ;;  %v6760_v15 = vpop.f32.mrf.mxu2  ;;  %v1577_v43 = vpop.f32.mrf.mxu0  ;;  %v4005_v32 = vld [vmem:[%s7476_s3 + $0x10] sm:$0xf0]  ;;  %v4312_v11 = vor.u32 %v4941_v8, %v4309_v27  ;;  %v4387_v8 = vld [vmem:[%s7476_s3 + $0x300] sm:$0xf]  ;;  %v4963_v27 = vld [vmem:[%s7476_s3 + $0x30c] sm:$0xf0] }
 0x109   :  { %2626 = vmatpush.bf16.msra.mxu1 %v4232_v38  ;;  %v6765_v23 = vpop.f32.mrf.mxu3  ;;  %v1590_v25 = vpop.f32.mrf.mxu1  ;;  %v4152_v38 = vor.u32 %v4901_v41, %v4149_v29  ;;  %v4008_v47 = vor.u32 %v4865_v58, %v4005_v32  ;;  %v4884_v43 = vld [vmem:[%s7476_s3 + $0x94] sm:$0xf0]  ;;  %v4059_v29 = vld [vmem:[%s7476_s3 + $0x68] sm:$0xf]  ;;  %v4975_v58 = vld [vmem:[%s7476_s3 + $0x36c] sm:$0xf0] }
 0x10a   :  { %2581 = vmatmul.bf16.vlgmr.msrb.gmra.mxu1 %v6758_v34  ;;  %2639 = vmatpush.bf16.msra.mxu2 %v4360_v37  ;;  %v4203_v25 = vld [vmem:[%s7476_s3 + $0x188] sm:$0xf]  ;;  %v4076_v41 = vor.u32 %v4884_v43, %v4075_v21  ;;  %v4435_v37 = vld [vmem:[%s7476_s3 + $0x360] sm:$0xf]  ;;  %v4880_v32 = vld [vmem:[%s7476_s3 + $0x74] sm:$0xf0] }
 0x10b   :  { %v4436_v33 = vor.u32 %v4975_v58, %v4435_v37  ;;  %v4060_v45 = vor.u32 %v4880_v32, %v4059_v29  ;;  %v4125_v21 = vld [vmem:[%s7476_s3 + $0xf8] sm:$0xf0]  ;;  %v4985_v29 = vld [vmem:[%s7476_s3 + $0x3c4] sm:$0xf]  ;;  %v4485_v37 = vld [vmem:[%s7476_s3 + $0x3d0] sm:$0xf0] }
 0x10c   :  { %2614 = vmatpush.bf16.msra.mxu0 %v4088_v46  ;;  %v4341_v46 = vld [vmem:[%s7476_s3 + $0x2b0] sm:$0xf0]  ;;  %v4890_v32 = vld [vmem:[%s7476_s3 + $0xcc] sm:$0xf] }
 0x10d   :  { %2627 = vmatpush.bf16.msra.mxu1 %v4216_v60  ;;  %v4344_v50 = vor.u32 %v4949_v39, %v4341_v46  ;;  %v4043_v46 = vld [vmem:[%s7476_s3 + $0x48] sm:$0xf] }
 0x10f   :  { %2640 = vmatpush.bf16.msra.mxu2 %v4344_v50  ;;  %v4876_v50 = vld [vmem:[%s7476_s3 + $0x54] sm:$0xf0] }
 0x110   :  { %2615 = vmatpush.bf16.msra.mxu0 %v4072_v54  ;;  %v1603_v60 = vpop.f32.mrf.mxu2  ;;  %v4987_v54 = vld [vmem:[%s7476_s3 + $0x3cc] sm:$0xf0]  ;;  %v4044_v56 = vor.u32 %v4876_v50, %v4043_v46 }
 0x111   :  { %2628 = vmatpush.bf16.msra.mxu1 %v4200_v59  ;;  %v1616_v22 = vpop.f32.mrf.mxu3  ;;  %v4484_v57 = vor.u32 %v4987_v54, %v4483_v19  ;;  %v4945_v59 = vld [vmem:[%s7476_s3 + $0x284] sm:$0xf]  ;;  %v4188_v60 = vor.u32 %v4912_v63, %v4187_v36  ;;  %v4908_v19 = vld [vmem:[%s7476_s3 + $0x154] sm:$0xf0]  ;;  %v4237_v36 = vld [vmem:[%s7476_s3 + $0x1d8] sm:$0xf0] }
 0x112   :  { %v4328_v61 = vor.u32 %v4945_v59, %v4325_v62  ;;  %v4929_v22 = vld [vmem:[%s7476_s3 + $0x204] sm:$0xf]  ;;  %v4172_v59 = vor.u32 %v4908_v19, %v4171_v53  ;;  %v4027_v62 = vld [vmem:[%s7476_s3 + $0x28] sm:$0xf]  ;;  %v4882_v19 = vld [vmem:[%s7476_s3 + $0x8c] sm:$0xf] }
 0x113   :  { %2600 = vmatpush.bf16.msrb.mxu3 %v4484_v57 }
 0x114   :  { %2616 = vmatpush.bf16.msra.mxu0 %v4056_v5  ;;  %v4236_v5 = vor.u32 %v4924_v0, %v4235_v51  ;;  %2641 = vmatpush.bf16.msra.mxu2 %v4328_v61  ;;  %v4872_v51 = vld [vmem:[%s7476_s3 + $0x34] sm:$0xf0]  ;;  %v4967_v0 = vld [vmem:[%s7476_s3 + $0x32c] sm:$0xf0] }
 0x115   :  { %2629 = vmatpush.bf16.msra.mxu1 %v4184_v9  ;;  %v4219_v9 = vld [vmem:[%s7476_s3 + $0x1a8] sm:$0xf] }
 0x117   :  { %2601 = vmatpush.bf16.msrb.mxu3 %v4468_v7  ;;  %v4028_v7 = vor.u32 %v4872_v51, %v4027_v62  ;;  %v4973_v62 = vld [vmem:[%s7476_s3 + $0x364] sm:$0xf]  ;;  %v4437_v51 = vld [vmem:[%s7476_s3 + $0x370] sm:$0xf0] }
 0x118   :  { %2617 = vmatpush.bf16.msra.mxu0 %v4040_v17  ;;  %v4220_v17 = vor.u32 %v4920_v10, %v4219_v9  ;;  %2642 = vmatpush.bf16.msra.mxu2 %v4312_v11  ;;  %v4139_v10 = vld [vmem:[%s7476_s3 + $0x108] sm:$0xf]  ;;  %v4388_v11 = vor.u32 %v4963_v27, %v4387_v8 }
 0x119   :  { %2630 = vmatpush.bf16.msra.mxu1 %v4168_v20  ;;  %v4452_v20 = vor.u32 %v4979_v13, %v4451_v12  ;;  %v4501_v12 = vld [vmem:[%s7476_s3 + $0x3f0] sm:$0xf0] }
 0x11b   :  { %2602 = vmatpush.bf16.msrb.mxu3 %v4452_v20  ;;  %v4926_v20 = vld [vmem:[%s7476_s3 + $0x1ec] sm:$0xf] }
 0x11c   :  { %2618 = vmatpush.bf16.msra.mxu0 %v4024_v30  ;;  %v4204_v30 = vor.u32 %v4916_v26, %v4203_v25  ;;  %2643 = vmatpush.bf16.msra.mxu2 %v4296_v40  ;;  %v4140_v40 = vor.u32 %v4900_v14, %v4139_v10  ;;  %v4421_v10 = vld [vmem:[%s7476_s3 + $0x350] sm:$0xf0] }
 0x11d   :  { %2631 = vmatpush.bf16.msra.mxu1 %v4152_v38  ;;  %v4277_v38 = vld [vmem:[%s7476_s3 + $0x230] sm:$0xf0] }
 0x11e   :  { %v4280_v42 = vor.u32 %v4933_v35, %v4277_v38  ;;  %v4488_v35 = vor.u32 %v4985_v29, %v4485_v37  ;;  %v4922_v38 = vld [vmem:[%s7476_s3 + $0x1cc] sm:$0xf] }
 0x11f   :  { %2603 = vmatpush.bf16.msrb.mxu3 %v4436_v33  ;;  %v4109_v33 = vld [vmem:[%s7476_s3 + $0xd8] sm:$0xf0]  ;;  %v4240_v46 = vor.u32 %v4922_v38, %v4237_v36 }
 0x120   :  { %2619 = vmatpush.bf16.msra.mxu0 %v4008_v47  ;;  %v6917_v39 = vpop.f32.mrf.mxu0  ;;  %2644 = vmatpush.bf16.msra.mxu2 %v4280_v42  ;;  %v4420_v47 = vor.u32 %v4971_v49, %v4419_v48  ;;  %v4112_v63 = vor.u32 %v4890_v32, %v4109_v33  ;;  %v4469_v42 = vld [vmem:[%s7476_s3 + $0x3b0] sm:$0xf0]  ;;  %v4886_v48 = vld [vmem:[%s7476_s3 + $0xac] sm:$0xf]  ;;  %v4093_v49 = vld [vmem:[%s7476_s3 + $0xb8] sm:$0xf0] }
 0x121   :  { %2632 = vmatpush.bf16.msra.mxu1 %v4136_v52  ;;  %v6919_v44 = vpop.f32.mrf.mxu1  ;;  %v4261_v52 = vld [vmem:[%s7476_s3 + $0x210] sm:$0xf0]  ;;  %v4902_v33 = vld [vmem:[%s7476_s3 + $0x12c] sm:$0xf] }
 0x122   :  { %v4264_v54 = vor.u32 %v4929_v22, %v4261_v52  ;;  %v4453_v22 = vld [vmem:[%s7476_s3 + $0x390] sm:$0xf0]  ;;  %v4096_v52 = vor.u32 %v4886_v48, %v4093_v49 }
 0x123   :  { %2620 = vmatmul.bf16.vlgmr.msra.gmra.mxu0 %v6675_v31  ;;  %2604 = vmatpush.bf16.msrb.mxu3 %v4420_v47  ;;  %v4977_v47 = vld [vmem:[%s7476_s3 + $0x384] sm:$0xf]  ;;  %v4389_v48 = vld [vmem:[%s7476_s3 + $0x310] sm:$0xf0] }
 0x124   :  { %2664 = vmatpush.bf16.msrb.mxu0 %v4124_v18  ;;  %2633 = vmatmul.bf16.vlgmr.msra.gmra.mxu1 %v6758_v34  ;;  %v259_v18 = vperm.slane %v6460_v28, 2  ;;  %v4403_v28 = vld [vmem:[%s7476_s3 + $0x320] sm:$0xf] }
 0x125   :  { %2677 = vmatpush.bf16.msrb.mxu1 %v4252_v55  ;;  %2645 = vmatpush.bf16.msra.mxu2 %v4264_v54  ;;  %v4404_v4 = vor.u32 %v4967_v0, %v4403_v28  ;;  %v4077_v54 = vld [vmem:[%s7476_s3 + $0x98] sm:$0xf0]  ;;  %v4914_v28 = vld [vmem:[%s7476_s3 + $0x18c] sm:$0xf] }
 0x126   :  { %v1602_v61 = vadd.f32 %v6760_v15, %v259_v18  ;;  %v4868_v15 = vld [vmem:[%s7476_s3 + $0x14] sm:$0xf0] }
 0x127   :  { %2605 = vmatpush.bf16.msrb.mxu3 %v4404_v4 }
 0x128   :  { %2665 = vmatpush.bf16.msrb.mxu0 %v4108_v1  ;;  %v6946_v55 = vpop.f32.mrf.mxu2  ;;  %v4155_v1 = vld [vmem:[%s7476_s3 + $0x128] sm:$0xf]  ;;  %v1629_v3 = vpop.f32.mrf.mxu0  ;;  %v1615_v13 = vadd.f32 %v6765_v23, %v1602_v61  ;;  %v4253_v23 = vld [vmem:[%s7476_s3 + $0x1f8] sm:$0xf0] }
 0x129   :  { %2678 = vmatpush.bf16.msrb.mxu1 %v4236_v5  ;;  %v6948_v57 = vpop.f32.mrf.mxu3  ;;  %v4011_v5 = vld [vmem:[%s7476_s3 + $0x8] sm:$0xf]  ;;  %v1642_v6 = vpop.f32.mrf.mxu1  ;;  %v4156_v9 = vor.u32 %v4904_v2, %v4155_v1  ;;  %v4878_v1 = vld [vmem:[%s7476_s3 + $0x6c] sm:$0xf]  ;;  %v4061_v2 = vld [vmem:[%s7476_s3 + $0x78] sm:$0xf0]  ;;  %v4440_v3 = vor.u32 %v4973_v62, %v4437_v51 }
 0x12a   :  { %v4012_v25 = vor.u32 %v4868_v15, %v4011_v5  ;;  %v1628_v58 = vadd.f32 %v6917_v39, %v1615_v13  ;;  %v4981_v39 = vld [vmem:[%s7476_s3 + $0x3a4] sm:$0xf]  ;;  %v4910_v5 = vld [vmem:[%s7476_s3 + $0x16c] sm:$0xf]  ;;  %v4960_v15 = vld [vmem:[%s7476_s3 + $0x2f4] sm:$0xf0]  ;;  %v4064_v8 = vor.u32 %v4878_v1, %v4061_v2 }
 0x12b   :  { %2606 = vmatpush.bf16.msrb.mxu3 %v4388_v11  ;;  %v4472_v50 = vor.u32 %v4981_v39, %v4469_v42  ;;  %v4045_v13 = vld [vmem:[%s7476_s3 + $0x58] sm:$0xf0]  ;;  %v4952_v39 = vld [vmem:[%s7476_s3 + $0x2b4] sm:$0xf0]  ;;  %v4315_v51 = vld [vmem:[%s7476_s3 + $0x268] sm:$0xf] }
 0x12c   :  { %2666 = vmatpush.bf16.msrb.mxu0 %v4092_v16  ;;  %v4989_v16 = vld [vmem:[%s7476_s3 + $0x3e4] sm:$0xf]  ;;  %v4299_v2 = vld [vmem:[%s7476_s3 + $0x248] sm:$0xf] }
 0x12d   :  { %2679 = vmatpush.bf16.msrb.mxu1 %v4220_v17  ;;  %v4894_v17 = vld [vmem:[%s7476_s3 + $0xec] sm:$0xf]  ;;  %v4504_v43 = vor.u32 %v4989_v16, %v4501_v12 }
 0x12e   :  { %v4874_v12 = vld [vmem:[%s7476_s3 + $0x4c] sm:$0xf] }
 0x12f   :  { %2651 = vmatpush.bf16.msra.mxu3 %v4504_v43 }
 0x130   :  { %2667 = vmatpush.bf16.msrb.mxu0 %v4076_v41  ;;  %v1655_v24 = vpop.f32.mrf.mxu2  ;;  %v4128_v41 = vor.u32 %v4894_v17, %v4125_v21  ;;  %v4906_v17 = vld [vmem:[%s7476_s3 + $0x14c] sm:$0xf]  ;;  %v4173_v21 = vld [vmem:[%s7476_s3 + $0x158] sm:$0xf0] }
 0x131   :  { %2680 = vmatpush.bf16.msrb.mxu1 %v4204_v30  ;;  %v1668_v26 = vpop.f32.mrf.mxu3  ;;  %v4256_v30 = vor.u32 %v4926_v20, %v4253_v23  ;;  %v4363_v23 = vld [vmem:[%s7476_s3 + $0x2c8] sm:$0xf]  ;;  %v4956_v24 = vld [vmem:[%s7476_s3 + $0x2d4] sm:$0xf0] }
 0x132   :  { %v4965_v26 = vld [vmem:[%s7476_s3 + $0x324] sm:$0xf]  ;;  %v4364_v32 = vor.u32 %v4956_v24, %v4363_v23 }
 0x133   :  { %2652 = vmatpush.bf16.msra.mxu3 %v4488_v35  ;;  %v4157_v35 = vld [vmem:[%s7476_s3 + $0x138] sm:$0xf0] }
 0x134   :  { %2668 = vmatpush.bf16.msrb.mxu0 %v4060_v45  ;;  %v1641_v45 = vadd.f32 %v6919_v44, %v1628_v58  ;;  %v4221_v44 = vld [vmem:[%s7476_s3 + $0x1b8] sm:$0xf0]  ;;  %v4870_v58 = vld [vmem:[%s7476_s3 + $0x2c] sm:$0xf]  ;;  %v4160_v49 = vor.u32 %v4902_v33, %v4157_v35 }
 0x135   :  { %2681 = vmatpush.bf16.msrb.mxu1 %v4188_v60  ;;  %v4918_v60 = vld [vmem:[%s7476_s3 + $0x1ac] sm:$0xf] }
 0x136   :  { %v1654_v18 = vadd.f32 %v6946_v55, %v1641_v45  ;;  %v4224_v53 = vor.u32 %v4918_v60, %v4221_v44  ;;  %v4205_v55 = vld [vmem:[%s7476_s3 + $0x198] sm:$0xf0]  ;;  %v4866_v60 = vld [vmem:[%s7476_s3 + $0xc] sm:$0xf] }
 0x137   :  { %2653 = vmatpush.bf16.msra.mxu3 %v4472_v50  ;;  %v4208_v61 = vor.u32 %v4914_v28, %v4205_v55  ;;  %v4013_v50 = vld [vmem:[%s7476_s3 + $0x18] sm:$0xf0]  ;;  %v4946_v35 = vld [vmem:[%s7476_s3 + $0x28c] sm:$0xf] }
 0x138   :  { %2669 = vmatpush.bf16.msrb.mxu0 %v4044_v56  ;;  %v4456_v56 = vor.u32 %v4977_v47, %v4453_v22  ;;  %v1667_v0 = vadd.f32 %v6948_v57, %v1654_v18  ;;  %v4189_v57 = vld [vmem:[%s7476_s3 + $0x178] sm:$0xf0]  ;;  %v4898_v47 = vld [vmem:[%s7476_s3 + $0x10c] sm:$0xf]  ;;  %v4331_v18 = vld [vmem:[%s7476_s3 + $0x288] sm:$0xf] }
 0x139   :  { %2682 = vmatpush.bf16.msrb.mxu1 %v4172_v59  ;;  %v4080_v59 = vor.u32 %v4882_v19, %v4077_v54  ;;  %v4192_v16 = vor.u32 %v4910_v5, %v4189_v57  ;;  %v4141_v22 = vld [vmem:[%s7476_s3 + $0x118] sm:$0xf0]  ;;  %v4016_v19 = vor.u32 %v4866_v60, %v4013_v50  ;;  %v4283_v57 = vld [vmem:[%s7476_s3 + $0x228] sm:$0xf] }
 0x13a   :  { %v4144_v54 = vor.u32 %v4898_v47, %v4141_v22  ;;  %v4317_v60 = vld [vmem:[%s7476_s3 + $0x278] sm:$0xf0]  ;;  %v4475_v50 = vld [vmem:[%s7476_s3 + $0x3a8] sm:$0xf] }
 0x13b   :  { %2654 = vmatpush.bf16.msra.mxu3 %v4456_v56 }
 0x13c   :  { %2670 = vmatpush.bf16.msrb.mxu0 %v4028_v7  ;;  %v4379_v7 = vld [vmem:[%s7476_s3 + $0x2e8] sm:$0xf] }
 0x13d   :  { %2683 = vmatpush.bf16.msrb.mxu1 %v4156_v9  ;;  %v4969_v9 = vld [vmem:[%s7476_s3 + $0x344] sm:$0xf]  ;;  %v4380_v14 = vor.u32 %v4960_v15, %v4379_v7 }
 0x13e   :  { %v4424_v43 = vor.u32 %v4969_v9, %v4421_v10  ;;  %v4958_v9 = vld [vmem:[%s7476_s3 + $0x2ec] sm:$0xf]  ;;  %v4381_v10 = vld [vmem:[%s7476_s3 + $0x2f8] sm:$0xf0] }
 0x13f   :  { %2655 = vmatpush.bf16.msra.mxu3 %v4440_v3  ;;  %v4940_v3 = vld [vmem:[%s7476_s3 + $0x254] sm:$0xf0] }
 0x140   :  { %2671 = vmatpush.bf16.msrb.mxu0 %v4012_v25  ;;  %v1679_v4 = vpop.f32.mrf.mxu0  ;;  %v4048_v25 = vor.u32 %v4874_v12, %v4045_v13  ;;  %v4384_v12 = vor.u32 %v4958_v9, %v4381_v10  ;;  %v4954_v13 = vld [vmem:[%s7476_s3 + $0x2cc] sm:$0xf]  ;;  %v4509_v10 = vld [vmem:[%s7476_s3 + $0x3f8] sm:$0xf0] }
 0x141   :  { %2684 = vmatpush.bf16.msrb.mxu1 %v4140_v40  ;;  %v1680_v6 = vadd.f32 %v1679_v4, %v1667_v0  ;;  %v7090_v27 = vpop.f32.mrf.mxu1  ;;  %v4405_v40 = vld [vmem:[%s7476_s3 + $0x330] sm:$0xf0]  ;;  %v4944_v0 = vld [vmem:[%s7476_s3 + $0x274] sm:$0xf0]  ;;  %v4300_v4 = vor.u32 %v4940_v3, %v4299_v2  ;;  %v4427_v3 = vld [vmem:[%s7476_s3 + $0x348] sm:$0xf] }
 0x142   :  { %v4408_v36 = vor.u32 %v4965_v26, %v4405_v40  ;;  %v4950_v40 = vld [vmem:[%s7476_s3 + $0x2ac] sm:$0xf] }
 0x143   :  { %2672 = vmatmul.bf16.vlgmr.msrb.gmra.mxu0 %v6675_v31  ;;  %v1776_v11 = vmax.f32 %v1680_v6, 0.0  ;;  %2656 = vmatpush.bf16.msra.mxu3 %v4424_v43  ;;  %v4990_v9 = vld [vmem:[%s7476_s3 + $0x3ec] sm:$0xf] }
 0x144   :  { %2716 = vmatpush.bf16.msra.mxu0 %v4128_v41  ;;  %2685 = vmatmul.bf16.vlgmr.msrb.gmra.mxu1 %v6758_v34  ;;  %v4176_v41 = vor.u32 %v4906_v17, %v4173_v21 }
 0x145   :  { %2729 = vmatpush.bf16.msra.mxu1 %v4256_v30  ;;  %v7110_v20 = vpack.c.bf16 %v1776_v11, %v1776_v11  ;;  %v4029_v30 = vld [vmem:[%s7476_s3 + $0x38] sm:$0xf0] }
 0x146   :  { %v4032_v42 = vor.u32 %v4870_v58, %v4029_v30  ;;  %v4992_v58 = vld [vmem:[%s7476_s3 + $0x3f4] sm:$0xf0] }
 0x147   :  { %2594 = vmatmul.bf16.vlgmr.msrb.gmra.mxu2 %v7110_v20  ;;  %2657 = vmatpush.bf16.msra.mxu3 %v4408_v36 }
 0x148   :  { %2717 = vmatpush.bf16.msra.mxu0 %v4112_v63  ;;  %v1705_v29 = vpop.f32.mrf.mxu2  ;;  %2690 = vmatpush.bf16.msrb.mxu2 %v4380_v14  ;;  %v1681_v38 = vpop.f32.mrf.mxu0  ;;  %v4347_v63 = vld [vmem:[%s7476_s3 + $0x2a8] sm:$0xf]  ;;  %v4365_v14 = vld [vmem:[%s7476_s3 + $0x2d8] sm:$0xf0] }
 0x149   :  { %2730 = vmatpush.bf16.msra.mxu1 %v4240_v46  ;;  %v1718_v37 = vpop.f32.mrf.mxu3  ;;  %v1694_v45 = vpop.f32.mrf.mxu1  ;;  %v4961_v46 = vld [vmem:[%s7476_s3 + $0x304] sm:$0xf]  ;;  %v4348_v44 = vor.u32 %v4952_v39, %v4347_v63  ;;  %v4333_v38 = vld [vmem:[%s7476_s3 + $0x298] sm:$0xf0]  ;;  %v4491_v63 = vld [vmem:[%s7476_s3 + $0x3c8] sm:$0xf] }
 0x14a   :  { %v4988_v39 = vld [vmem:[%s7476_s3 + $0x3d4] sm:$0xf0] }
 0x14c   :  { %2718 = vmatpush.bf16.msra.mxu0 %v4096_v52  ;;  %2691 = vmatpush.bf16.msrb.mxu2 %v4364_v32  ;;  %v4392_v52 = vor.u32 %v4961_v46, %v4389_v48  ;;  %v4336_v46 = vor.u32 %v4946_v35, %v4333_v38  ;;  %v4492_v48 = vor.u32 %v4988_v39, %v4491_v63  ;;  %v4970_v35 = vld [vmem:[%s7476_s3 + $0x34c] sm:$0xf]  ;;  %v4429_v38 = vld [vmem:[%s7476_s3 + $0x358] sm:$0xf0] }
 0x14d   :  { %2731 = vmatpush.bf16.msra.mxu1 %v4224_v53  ;;  %v4948_v53 = vld [vmem:[%s7476_s3 + $0x294] sm:$0xf0]  ;;  %v4432_v39 = vor.u32 %v4970_v35, %v4429_v38 }
 0x14e   :  { %v4332_v55 = vor.u32 %v4948_v53, %v4331_v18  ;;  %2658 = vmatpush.bf16.msra.mxu3 %v4392_v52  ;;  %v4938_v52 = vld [vmem:[%s7476_s3 + $0x24c] sm:$0xf]  ;;  %v4301_v18 = vld [vmem:[%s7476_s3 + $0x258] sm:$0xf0]  ;;  %v4459_v53 = vld [vmem:[%s7476_s3 + $0x388] sm:$0xf] }
 0x150   :  { %2719 = vmatpush.bf16.msra.mxu0 %v4080_v59  ;;  %v1707_v56 = vpop.f32.mrf.mxu2  ;;  %2692 = vmatpush.bf16.msrb.mxu2 %v4348_v44  ;;  %v5027_v59 = vld [vmem:[%s7475_s2] sm:$0xf]  ;;  %v4984_v44 = vld [vmem:[%s7476_s3 + $0x3b4] sm:$0xf0] }
 0x151   :  { %2732 = vmatpush.bf16.msra.mxu1 %v4208_v61  ;;  %v1720_v28 = vpop.f32.mrf.mxu3  ;;  %v260_v62 = vperm.slane %v5027_v59, 3  ;;  %v4316_v61 = vor.u32 %v4944_v0, %v4315_v51  ;;  %v4476_v22 = vor.u32 %v4984_v44, %v4475_v50  ;;  %v4443_v59 = vld [vmem:[%s7476_s3 + $0x368] sm:$0xf]  ;;  %v4962_v50 = vld [vmem:[%s7476_s3 + $0x30c] sm:$0xf] }
 0x152   :  { %v4934_v28 = vld [vmem:[%s7476_s3 + $0x22c] sm:$0xf]  ;;  %v4397_v44 = vld [vmem:[%s7476_s3 + $0x318] sm:$0xf0] }
 0x153   :  { %v1693_v1 = vadd.f32 %v7090_v27, %v260_v62  ;;  %v4976_v62 = vld [vmem:[%s7476_s3 + $0x374] sm:$0xf0] }
 0x154   :  { %2720 = vmatpush.bf16.msra.mxu0 %v4064_v8  ;;  %2693 = vmatpush.bf16.msrb.mxu2 %v4332_v55  ;;  %v4932_v8 = vld [vmem:[%s7476_s3 + $0x214] sm:$0xf0]  ;;  %v4285_v55 = vld [vmem:[%s7476_s3 + $0x238] sm:$0xf0]  ;;  %v4444_v0 = vor.u32 %v4976_v62, %v4443_v59  ;;  %v4997_v62 = vld [vmem:[%s7478_s5 + $0x20] sm:$0xff] }
 0x155   :  { %2733 = vmatpush.bf16.msra.mxu1 %v4192_v16  ;;  %v1706_v5 = vadd.f32 %v1705_v29, %v1693_v1  ;;  %v4288_v51 = vor.u32 %v4934_v28, %v4285_v55  ;;  %v4269_v1 = vld [vmem:[%s7476_s3 + $0x218] sm:$0xf0]  ;;  %v4999_v28 = vld [vmem:[%s7478_s5 + $0x30] sm:$0xff] }
 0x157   :  { %2646 = vmatmul.bf16.vlgmr.msra.gmra.mxu2 %v7110_v20  ;;  %v1719_v7 = vadd.f32 %v1718_v37, %v1706_v5  ;;  %v4507_v37 = vld [vmem:[%s7476_s3 + $0x3e8] sm:$0xf] }
 0x158   :  { %2721 = vmatpush.bf16.msra.mxu0 %v4048_v25  ;;  %2694 = vmatpush.bf16.msrb.mxu2 %v4316_v61  ;;  %v4368_v25 = vor.u32 %v4954_v13, %v4365_v14  ;;  %v4508_v33 = vor.u32 %v4992_v58, %v4507_v37  ;;  %v4930_v61 = vld [vmem:[%s7476_s3 + $0x20c] sm:$0xf]  ;;  %v4445_v58 = vld [vmem:[%s7476_s3 + $0x378] sm:$0xf0] }
 0x159   :  { %2734 = vmatpush.bf16.msra.mxu1 %v4176_v41  ;;  %v4349_v41 = vld [vmem:[%s7476_s3 + $0x2b8] sm:$0xf0]  ;;  %v4272_v5 = vor.u32 %v4930_v61, %v4269_v1  ;;  %v4986_v13 = vld [vmem:[%s7476_s3 + $0x3cc] sm:$0xf]  ;;  %v4995_v1 = vld [vmem:[%s7478_s5 + $0x10] sm:$0xff] }
 0x15a   :  { %v4352_v32 = vor.u32 %v4950_v40, %v4349_v41  ;;  %v4461_v40 = vld [vmem:[%s7476_s3 + $0x398] sm:$0xf0]  ;;  %v4974_v37 = vld [vmem:[%s7476_s3 + $0x36c] sm:$0xf] }
 0x15c   :  { %2722 = vmatpush.bf16.msra.mxu0 %v4032_v42  ;;  %2695 = vmatpush.bf16.msrb.mxu2 %v4300_v4  ;;  %v4972_v4 = vld [vmem:[%s7476_s3 + $0x354] sm:$0xf0] }
 0x15d   :  { %2735 = vmatpush.bf16.msra.mxu1 %v4160_v49  ;;  %v4942_v49 = vld [vmem:[%s7476_s3 + $0x26c] sm:$0xf] }
 0x15e   :  { %v4320_v47 = vor.u32 %v4942_v49, %v4317_v60 }
 0x160   :  { %2723 = vmatpush.bf16.msra.mxu0 %v4016_v19  ;;  %v1731_v15 = vpop.f32.mrf.mxu0  ;;  %v4980_v19 = vld [vmem:[%s7476_s3 + $0x394] sm:$0xf0] }
 0x161   :  { %2736 = vmatpush.bf16.msra.mxu1 %v4144_v54  ;;  %v1744_v27 = vpop.f32.mrf.mxu1  ;;  %v1732_v11 = vadd.f32 %v1731_v15, %v1719_v7  ;;  %v4304_v54 = vor.u32 %v4938_v52, %v4301_v18  ;;  %v4460_v56 = vor.u32 %v4980_v19, %v4459_v53  ;;  %v7296_v15 = vld [vmem:[%s7477_s4] sm:$0xf]  ;;  %v5000_v53 = vld [vmem:[%s7478_s5 + $0x38] sm:$0xff] }
 0x162   :  { %v1914_v52 = vperm.slane %v7296_v15, 2 }
 0x163   :  { %2724 = vmatmul.bf16.vlgmr.msra.gmra.mxu0 %v6675_v31  ;;  %v4936_v31 = vld [vmem:[%s7476_s3 + $0x234] sm:$0xf0]  ;;  %v1745_v17 = vadd.f32 %v1744_v27, %v1732_v11  ;;  %v1912_v11 = vperm.slane %v7296_v15, 0 }
 0x164   :  { %2737 = vmatmul.bf16.vlgmr.msra.gmra.mxu1 %v6758_v34  ;;  %v4284_v6 = vor.u32 %v4936_v31, %v4283_v57  ;;  %v4267_v34 = vld [vmem:[%s7476_s3 + $0x208] sm:$0xf]  ;;  %v4428_v57 = vor.u32 %v4972_v4, %v4427_v3  ;;  %v4964_v27 = vld [vmem:[%s7476_s3 + $0x314] sm:$0xf0]  ;;  %3036 = vmatpush.bf16.msrb.mxu0 %v5000_v53  ;;  %v1915_v3 = vperm.slane %v7296_v15, 3  ;;  %v5017_v53 = vld [vmem:[%s7478_s5 + $0xc0] sm:$0xff] }
 0x165   :  { %v4268_v16 = vor.u32 %v4932_v8, %v4267_v34  ;;  %v4411_v31 = vld [vmem:[%s7476_s3 + $0x328] sm:$0xf] }
 0x166   :  { %2696 = vmatpush.bf16.msrb.mxu2 %v4284_v6  ;;  %v4968_v6 = vld [vmem:[%s7476_s3 + $0x334] sm:$0xf0]  ;;  %v4395_v8 = vld [vmem:[%s7476_s3 + $0x308] sm:$0xf] }
 0x167   :  { %v4412_v7 = vor.u32 %v4968_v6, %v4411_v31  ;;  %v4994_v4 = vld [vmem:[%s7478_s5 + $0x8] sm:$0xff] }
 0x168   :  { %v1757_v21 = vpop.f32.mrf.mxu2  ;;  %v1733_v24 = vpop.f32.mrf.mxu0  ;;  %3037 = vmatpush.bf16.msrb.mxu0 %v4999_v28 }
 0x169   :  { %v1758_v43 = vadd.f32 %v1757_v21, %v1745_v17  ;;  %v1770_v23 = vpop.f32.mrf.mxu3  ;;  %v1746_v26 = vpop.f32.mrf.mxu1  ;;  %v4477_v24 = vld [vmem:[%s7476_s3 + $0x3b8] sm:$0xf0] }
 0x16a   :  { %2697 = vmatpush.bf16.msrb.mxu2 %v4268_v16  ;;  %v4396_v16 = vor.u32 %v4964_v27, %v4395_v8  ;;  %v4978_v26 = vld [vmem:[%s7476_s3 + $0x38c] sm:$0xf]  ;;  %v5004_v27 = vld [vmem:[%s7478_s5 + $0x58] sm:$0xff] }
 0x16b   :  { %v1771_v29 = vadd.f32 %v1770_v23, %v1758_v43  ;;  %v4982_v23 = vld [vmem:[%s7476_s3 + $0x3ac] sm:$0xf] }
 0x16d   :  { %2698 = vmatmul.bf16.vlgmr.msrb.gmra.mxu2 %v7110_v20  ;;  %v1777_v30 = vmax.f32 %v1771_v29, 0.0  ;;  %v4464_v29 = vor.u32 %v4978_v26, %v4461_v40 }
 0x16e   :  { %2742 = vmatpush.bf16.msra.mxu2 %v4384_v12  ;;  %v4512_v12 = vor.u32 %v4990_v9, %v4509_v10  ;;  %v5016_v9 = vld [vmem:[%s7478_s5 + $0xb8] sm:$0xff]  ;;  %v5003_v10 = vld [vmem:[%s7478_s5 + $0x50] sm:$0xff] }
 0x16f   :  { %v7229_v36 = vpack.c.bf16 %v1777_v30, %v1777_v30  ;;  %v1913_v30 = vperm.slane %v7296_v15, 1  ;;  %v5005_v15 = vld [vmem:[%s7478_s5 + $0x60] sm:$0xff] }
 0x170   :  { %v1759_v42 = vpop.f32.mrf.mxu2 }
 0x171   :  { %v1772_v45 = vpop.f32.mrf.mxu3  ;;  %2607 = vmatmul.bf16.vlgmr.msrb.gmra.mxu3 %v7229_v36 }
 0x172   :  { %2743 = vmatpush.bf16.msra.mxu2 %v4368_v25  ;;  %2703 = vmatpush.bf16.msrb.mxu3 %v4508_v33  ;;  %v4480_v25 = vor.u32 %v4982_v23, %v4477_v24  ;;  %v4966_v45 = vld [vmem:[%s7476_s3 + $0x32c] sm:$0xf]  ;;  %v5013_v23 = vld [vmem:[%s7478_s5 + $0xa0] sm:$0xff]  ;;  %v5012_v24 = vld [vmem:[%s7478_s5 + $0x98] sm:$0xff] }
 0x176   :  { %2744 = vmatpush.bf16.msra.mxu2 %v4352_v32  ;;  %2704 = vmatpush.bf16.msrb.mxu3 %v4492_v48  ;;  %v4448_v32 = vor.u32 %v4974_v37, %v4445_v58 }
 0x17a   :  { %2745 = vmatpush.bf16.msra.mxu2 %v4336_v46  ;;  %2705 = vmatpush.bf16.msrb.mxu3 %v4476_v22  ;;  %v4413_v46 = vld [vmem:[%s7476_s3 + $0x338] sm:$0xf0] }
 0x17b   :  { %v4416_v49 = vor.u32 %v4966_v45, %v4413_v46 }
 0x17e   :  { %2746 = vmatpush.bf16.msra.mxu2 %v4320_v47  ;;  %2706 = vmatpush.bf16.msrb.mxu3 %v4460_v56  ;;  %v4400_v47 = vor.u32 %v4962_v50, %v4397_v44  ;;  %v5019_v44 = vld [vmem:[%s7478_s5 + $0xd0] sm:$0xff] }
 0x180   :  { %v2569_v2 = vpop.f32.mrf.mxu0 }
 0x181   :  { %2659 = vmatmul.bf16.vlgmr.msra.gmra.mxu3 %v7229_v36  ;;  %v2570_v14 = vadd.f32 %v2569_v2, %v1912_v11  ;;  %v5007_v2 = vld [vmem:[%s7478_s5 + $0x70] sm:$0xff] }
 0x182   :  { %2747 = vmatpush.bf16.msra.mxu2 %v4304_v54  ;;  %2707 = vmatpush.bf16.msrb.mxu3 %v4444_v0  ;;  %v4996_v0 = vld [vmem:[%s7478_s5 + $0x18] sm:$0xff]  ;;  %v5015_v11 = vld [vmem:[%s7478_s5 + $0xb0] sm:$0xff] }
 0x186   :  { %2748 = vmatpush.bf16.msra.mxu2 %v4288_v51  ;;  %2708 = vmatpush.bf16.msrb.mxu3 %v4428_v57  ;;  %v5008_v51 = vld [vmem:[%s7478_s5 + $0x78] sm:$0xff] }
 0x187   :  { %v2582_v17 = vpop.f32.mrf.mxu1  ;;  %3049 = vmatpush.bf16.msrb.mxu1 %v5008_v51 }
 0x188   :  { %v2571_v34 = vpop.f32.mrf.mxu0  ;;  %v7318_v43 = vadd.f32 %v2582_v17, %v2570_v14  ;;  %v5014_v14 = vld [vmem:[%s7478_s5 + $0xa8] sm:$0xff] }
 0x189   :  { %v4993_v34 = vld [vmem:[%s7478_s5] sm:$0xff] }
 0x18a   :  { %2749 = vmatpush.bf16.msra.mxu2 %v4272_v5  ;;  %2709 = vmatpush.bf16.msrb.mxu3 %v4412_v7  ;;  %v5006_v5 = vld [vmem:[%s7478_s5 + $0x68] sm:$0xff] }
 0x18b   :  { %3050 = vmatpush.bf16.msrb.mxu1 %v5007_v2 }
 0x18d   :  { %2750 = vmatmul.bf16.vlgmr.msra.gmra.mxu2 %v7110_v20  ;;  %v4493_v20 = vld [vmem:[%s7476_s3 + $0x3d8] sm:$0xf0] }
 0x18e   :  { %2710 = vmatpush.bf16.msrb.mxu3 %v4396_v16  ;;  %v4496_v21 = vor.u32 %v4986_v13, %v4493_v20  ;;  %3062 = vmatpush.bf16.msrb.mxu2 %v5016_v9  ;;  %v5002_v20 = vld [vmem:[%s7478_s5 + $0x48] sm:$0xff] }
 0x18f   :  { %v2584_v41 = vpop.f32.mrf.mxu1  ;;  %3051 = vmatpush.bf16.msrb.mxu1 %v5006_v5 }
 0x190   :  { %v5010_v41 = vld [vmem:[%s7478_s5 + $0x88] sm:$0xff] }
 0x191   :  { %2711 = vmatmul.bf16.vlgmr.msrb.gmra.mxu3 %v7229_v36 }
 0x192   :  { %2755 = vmatpush.bf16.msra.mxu3 %v4512_v12  ;;  %3063 = vmatpush.bf16.msrb.mxu2 %v5015_v11 }
 0x193   :  { %3052 = vmatpush.bf16.msrb.mxu1 %v5005_v15 }
 0x196   :  { %2756 = vmatpush.bf16.msra.mxu3 %v4496_v21  ;;  %3064 = vmatpush.bf16.msrb.mxu2 %v5014_v14  ;;  %v5001_v21 = vld [vmem:[%s7478_s5 + $0x40] sm:$0xff] }
 0x197   :  { %3053 = vmatpush.bf16.msrb.mxu1 %v5004_v27 }
 0x19a   :  { %2757 = vmatpush.bf16.msra.mxu3 %v4480_v25  ;;  %3065 = vmatpush.bf16.msrb.mxu2 %v5013_v23  ;;  %v5011_v25 = vld [vmem:[%s7478_s5 + $0x90] sm:$0xff] }
 0x19b   :  { %3054 = vmatpush.bf16.msrb.mxu1 %v5003_v10 }
 0x19e   :  { %2758 = vmatpush.bf16.msra.mxu3 %v4464_v29  ;;  %3066 = vmatpush.bf16.msrb.mxu2 %v5012_v24 }
 0x19f   :  { %3055 = vmatpush.bf16.msrb.mxu1 %v5002_v20 }
 0x1a0   :  { %v2621_v33 = vpop.f32.mrf.mxu0 }
 0x1a1   :  { %v2622_v63 = vadd.f32 %v2621_v33, %v1913_v30  ;;  %v2634_v42 = vpop.f32.mrf.mxu1  ;;  %v5024_v33 = vld [vmem:[%s7478_s5 + $0xf8] sm:$0xff] }
 0x1a2   :  { %2759 = vmatpush.bf16.msra.mxu3 %v4448_v32  ;;  %3067 = vmatpush.bf16.msrb.mxu2 %v5011_v25  ;;  %v5009_v32 = vld [vmem:[%s7478_s5 + $0x80] sm:$0xff] }
 0x1a3   :  { %v7352_v48 = vadd.f32 %v2634_v42, %v2622_v63  ;;  %3056 = vmatpush.bf16.msrb.mxu1 %v5001_v21  ;;  %v5022_v63 = vld [vmem:[%s7478_s5 + $0xe8] sm:$0xff] }
 0x1a6   :  { %2760 = vmatpush.bf16.msra.mxu3 %v4432_v39  ;;  %3068 = vmatpush.bf16.msrb.mxu2 %v5010_v41  ;;  %v5021_v39 = vld [vmem:[%s7478_s5 + $0xe0] sm:$0xff] }
 0x1a8   :  { %v2623_v60 = vpop.f32.mrf.mxu0 }
 0x1a9   :  { %v2636_v22 = vpop.f32.mrf.mxu1 }
 0x1aa   :  { %2761 = vmatpush.bf16.msra.mxu3 %v4416_v49  ;;  %3069 = vmatpush.bf16.msrb.mxu2 %v5009_v32  ;;  %v5020_v49 = vld [vmem:[%s7478_s5 + $0xd8] sm:$0xff] }
 0x1ae   :  { %2762 = vmatpush.bf16.msra.mxu3 %v4400_v47 }
 0x1b1   :  { %2763 = vmatmul.bf16.vlgmr.msra.gmra.mxu3 %v7229_v36  ;;  %v4998_v36 = vld [vmem:[%s7478_s5 + $0x28] sm:$0xff] }
 0x1b2   :  { %3038 = vmatpush.bf16.msrb.mxu0 %v4998_v36  ;;  %3075 = vmatpush.bf16.msrb.mxu3 %v5024_v33 }
 0x1b6   :  { %3039 = vmatpush.bf16.msrb.mxu0 %v4997_v62 }
 0x1ba   :  { %3040 = vmatpush.bf16.msrb.mxu0 %v4996_v0 }
 0x1be   :  { %3041 = vmatpush.bf16.msrb.mxu0 %v4995_v1 }
 0x1c0   :  { %v2673_v18 = vpop.f32.mrf.mxu0 }
 0x1c1   :  { %v2674_v19 = vadd.f32 %v2673_v18, %v1914_v52  ;;  %v2686_v54 = vpop.f32.mrf.mxu1 }
 0x1c2   :  { %3042 = vmatpush.bf16.msrb.mxu0 %v4994_v4 }
 0x1c3   :  { %v7365_v56 = vadd.f32 %v2686_v54, %v2674_v19 }
 0x1c6   :  { %3043 = vmatpush.bf16.msrb.mxu0 %v4993_v34 }
 0x1c8   :  { %v2675_v55 = vpop.f32.mrf.mxu0 }
 0x1c9   :  { %v2688_v59 = vpop.f32.mrf.mxu1 }
 0x1ca   :  { %v2595_v61 = vpop.f32.mrf.mxu2 }
 0x1cb   :  { %v2596_v40 = vadd.f32 %v2595_v61, %v7318_v43  ;;  %v5023_v43 = vld [vmem:[%s7478_s5 + $0xf0] sm:$0xff] }
 0x1cc   :  { %3076 = vmatpush.bf16.msrb.mxu3 %v5023_v43 }
 0x1d0   :  { %3077 = vmatpush.bf16.msrb.mxu3 %v5022_v63 }
 0x1d2   :  { %v2597_v31 = vpop.f32.mrf.mxu2 }
 0x1d3   :  { %v5026_v31 = vld [vmem:[%s7479_s6] ss:$0 sm:$0xff] }
 0x1d4   :  { %3078 = vmatpush.bf16.msrb.mxu3 %v5021_v39 }
 0x1d8   :  { %3079 = vmatpush.bf16.msrb.mxu3 %v5020_v49 }
 0x1da   :  { %v2647_v12 = vpop.f32.mrf.mxu2 }
 0x1db   :  { %v2648_v42 = vadd.f32 %v2647_v12, %v7352_v48  ;;  %v5018_v48 = vld [vmem:[%s7478_s5 + $0xc8] sm:$0xff] }
 0x1dc   :  { %3080 = vmatpush.bf16.msrb.mxu3 %v5019_v44 }
 0x1e0   :  { %v2725_v57 = vpop.f32.mrf.mxu0  ;;  %3081 = vmatpush.bf16.msrb.mxu3 %v5018_v48 }
 0x1e1   :  { %v2726_v6 = vadd.f32 %v2725_v57, %v1915_v3  ;;  %v2738_v7 = vpop.f32.mrf.mxu1 }
 0x1e2   :  { %v2649_v17 = vpop.f32.mrf.mxu2 }
 0x1e3   :  { %v7401_v8 = vadd.f32 %v2738_v7, %v2726_v6 }
 0x1e4   :  { %3082 = vmatpush.bf16.msrb.mxu3 %v5017_v53 }
 0x1e8   :  { %v2727_v16 = vpop.f32.mrf.mxu0 }
 0x1e9   :  { %v2740_v13 = vpop.f32.mrf.mxu1 }
 0x1f0   :  { %v2699_v26 = vpop.f32.mrf.mxu2 }
 0x1f1   :  { %v2700_v52 = vadd.f32 %v2699_v26, %v7365_v56 }
 0x1f4   :  { %v2608_v29 = vpop.f32.mrf.mxu3 }
 0x1f5   :  { %v2609_v37 = vadd.f32 %v2608_v29, %v2596_v40 }
 0x1f7   :  { %v2768_v30 = vmax.f32 %v2609_v37, 0.0 }
 0x1f8   :  { %v2701_v58 = vpop.f32.mrf.mxu2 }
 0x1f9   :  { %v2772_v35 = vpack.c.bf16 %v2768_v30, %v2768_v30 }
 0x1fb   :  { %3044 = vmatmul.bf16.vlgmr.msrb.gmra.mxu0 %v2772_v35 }
 0x1fc   :  { %v2610_v38 = vpop.f32.mrf.mxu3 }
 0x204   :  { %v2660_v45 = vpop.f32.mrf.mxu3 }
 0x205   :  { %v2661_v46 = vadd.f32 %v2660_v45, %v2648_v42 }
 0x207   :  { %v2769_v60 = vmax.f32 %v2661_v46, 0.0 }
 0x209   :  { %v2773_v50 = vpack.c.bf16 %v2769_v60, %v2769_v60 }
 0x20b   :  { %3057 = vmatmul.bf16.vlgmr.msrb.gmra.mxu1 %v2773_v50 }
 0x20c   :  { %v2662_v22 = vpop.f32.mrf.mxu3 }
 0x210   :  { %v2751_v47 = vpop.f32.mrf.mxu2 }
 0x211   :  { %v2752_v59 = vadd.f32 %v2751_v47, %v7401_v8 }
 0x214   :  { %v2712_v19 = vpop.f32.mrf.mxu3 }
 0x215   :  { %v2713_v54 = vadd.f32 %v2712_v19, %v2700_v52 }
 0x217   :  { %v2770_v28 = vmax.f32 %v2713_v54, 0.0 }
 0x218   :  { %v2753_v18 = vpop.f32.mrf.mxu2 }
 0x219   :  { %v2774_v55 = vpack.c.bf16 %v2770_v28, %v2770_v28 }
 0x21b   :  { %3070 = vmatmul.bf16.vlgmr.msrb.gmra.mxu2 %v2774_v55 }
 0x21c   :  { %v2714_v36 = vpop.f32.mrf.mxu3 }
 0x234   :  { %v2764_v62 = vpop.f32.mrf.mxu3 }
 0x235   :  { %v2765_v51 = vadd.f32 %v2764_v62, %v2752_v59 }
 0x237   :  { %v2771_v0 = vmax.f32 %v2765_v51, 0.0 }
 0x239   :  { %v2775_v61 = vpack.c.bf16 %v2771_v0, %v2771_v0 }
 0x23b   :  { %3083 = vmatmul.bf16.vlgmr.msrb.gmra.mxu3 %v2775_v61 }
 0x23c   :  { %v2766_v56 = vpop.f32.mrf.mxu3 }
 0x278   :  { %v3045_v1 = vpop.f32.mrf.mxu0 }
 0x279   :  { %v3046_v6 = vadd.f32 %v5026_v31, %v3045_v1 }
 0x280   :  { %v3047_v2 = vpop.f32.mrf.mxu0 }
 0x288   :  { %v3058_v3 = vpop.f32.mrf.mxu1 }
 0x289   :  { %v3059_v7 = vadd.f32 %v3058_v3, %v3046_v6 }
 0x290   :  { %v3060_v4 = vpop.f32.mrf.mxu1 }
 0x29e   :  { %v3071_v5 = vpop.f32.mrf.mxu2 }
 0x29f   :  { %v3072_v34 = vadd.f32 %v3071_v5, %v3059_v7 }
 0x2a6   :  { %v3073_v57 = vpop.f32.mrf.mxu2 }
 0x2be   :  { %v3084_v15 = vpop.f32.mrf.mxu3 }
 0x2bf   :  { %v3085_v8 = vadd.f32 %v3084_v15, %v3072_v34 }
 0x2c1   :  { %3088 = vst [vmem:[#allocation2] sm:$0xff] %v3085_v8 }
 0x2c2   :  { %3099 = dma.vmem_to_hbm [thread:$0]  %s3095_s22, 128, %s3097_s25, [#allocation3]  }
 0x2c6   :  { %v3086_v27 = vpop.f32.mrf.mxu3 }
 0x2c7   :  { %5052 = dma.done.wait [#allocation3], 128  }
 0x2c8   :  { %5053 = vsyncadd [#allocation3], 4294967168 }
 0x2c9   :  { %3104 = vsyncpa [#allocation3], 1 }

</bundles_post_ra>
